<compile_context>
chip_gen: v6e
topology: v6e:2x2x1
jax: 0.10.0
libtpu: 0.0.40
codegen_flags: <defaults>
</compile_context>

<pallas_src>
import functools
import math

import jax
import jax.numpy as jnp
from jax.experimental import pallas as pl
from jax.experimental.pallas import tpu as pltpu


def _layer_norm(y, gamma, beta, eps=1e-5):
    mu = jnp.mean(y, axis=-1, keepdims=True)
    var = jnp.mean((y - mu) ** 2, axis=-1, keepdims=True)
    return (y - mu) * jax.lax.rsqrt(var + eps) * gamma + beta


def decoder_layer_kernel(n_heads,
                         enc_ref, trg_ref, maskadd_ref,
                         wqkv_ref, bqkv_ref, wo_ref, bo_ref,
                         g1_ref, beta1_ref,
                         w1_ref, b1_ref, w2_ref, b2_ref,
                         g2_ref, beta2_ref,
                         out_ref, att_ref):
    f32 = jnp.float32
    mxu = wqkv_ref.dtype                       # matmul-input dtype (bf16 by default)

    Bt, nh, S, _ = att_ref.shape               # batch-block, heads, seq
    H = trg_ref.shape[-1]
    hd = H // n_heads
    G = Bt * n_heads

    x = enc_ref[...]                           # [Bt*S, H]  already mxu dtype (Q=K=V=enc_src)
    trg = trg_ref[...].astype(f32)             # [Bt*S, H]  f32 (residual path)

    # --- fused QKV projection: one wide MXU matmul --------------------------
    # 1/sqrt(head_dim) already folded into the Q columns (wrapper side).
    qkv = jnp.dot(x, wqkv_ref[...],
                  preferred_element_type=f32) + bqkv_ref[...].astype(f32)   # [Bt*S, 3H]

    # --- head split: one reshape + one relayout (no per-(b,h) slicing) ------
    # column order of Wqkv is [Q_h0..Q_h{n-1} | K... | V...]  ->  (3*nh, hd)
    qkv4 = qkv.reshape(Bt, S, 3 * n_heads, hd)
    qkv4 = jnp.swapaxes(qkv4, 1, 2)                       # [Bt, 3*nh, S, hd]
    qkv4 = qkv4.reshape(Bt, 3, n_heads, S, hd)
    q_g = qkv4[:, 0].reshape(G, S, hd).astype(mxu)        # [G, S, hd]
    k_g = qkv4[:, 1].reshape(G, S, hd).astype(mxu)
    v_g = qkv4[:, 2].reshape(G, S, hd).astype(mxu)

    # --- batched attention scores + masked softmax (f32) --------------------
    energy = jnp.einsum('gqd,gkd->gqk', q_g, k_g,
                        preferred_element_type=f32)       # [G, S, S]
    e4 = energy.reshape(Bt, n_heads, S, S) + maskadd_ref[...][:, None, :, :]

    m = jnp.max(e4, axis=-1, keepdims=True)
    p = jnp.exp(e4 - m)
    # NOTE: approximate reciprocal (EUP) -> attention rows sum to 1 only to
    # ~1e-3 relative; acceptable for inference, flip to exact divide if the
    # attention map must match the PyTorch softmax bit-for-bit.
    attn4 = p * pl.reciprocal(jnp.sum(p, axis=-1, keepdims=True), approx=True)
    # TODO(synk): dropout on attention weights is identity (inference mode).

    att_ref[...] = attn4.astype(att_ref.dtype)            # single slab store

    # --- attention-weighted values (batched) + head regroup ------------------
    ctx = jnp.einsum('gqk,gkd->gqd',
                     attn4.reshape(G, S, S).astype(mxu), v_g,
                     preferred_element_type=f32)          # [G, S, hd]
    ctx4 = jnp.swapaxes(ctx.reshape(Bt, n_heads, S, hd), 1, 2)   # [Bt, S, nh, hd]
    concat = ctx4.reshape(Bt * S, H)                      # [Bt*S, H]

    attn_out = jnp.dot(concat.astype(mxu), wo_ref[...],
                       preferred_element_type=f32) + bo_ref[...].astype(f32)

    # --- residual + layernorm ------------------------------------------------
    x1 = _layer_norm(trg + attn_out, g1_ref[...].astype(f32),
                     beta1_ref[...].astype(f32))

    # --- positionwise feedforward --------------------------------------------
    hff = jnp.maximum(
        jnp.dot(x1.astype(mxu), w1_ref[...],
                preferred_element_type=f32) + b1_ref[...].astype(f32), 0.0)
    ff = jnp.dot(hff.astype(mxu), w2_ref[...],
                 preferred_element_type=f32) + b2_ref[...].astype(f32)

    # --- residual + layernorm ------------------------------------------------
    x2 = _layer_norm(x1 + ff, g2_ref[...].astype(f32),
                     beta2_ref[...].astype(f32))

    out_ref[...] = x2.astype(out_ref.dtype)


def decoder_layer(trg, enc_src, trg_mask, params, n_heads, src_mask=None,
                  *, batch_block=None, mxu_dtype=jnp.bfloat16):
    # src_mask is accepted for interface parity with the PyTorch module but is
    # unused there as well (no encoder-attention in this DecoderLayer.forward).
    del src_mask
    B, S, H = trg.shape
    assert H % n_heads == 0
    hd = H // n_heads
    if batch_block is None:
        batch_block = 1            # >= 2 grid steps whenever B >= 2 (pipelining / megacore)
    assert B % batch_block == 0
    Bt = batch_block
    pf_dim = params["w1"].shape[1]

    # ---- layout plumbing (wrapper side, outside the hot loop) ---------------
    enc2d = enc_src.reshape(B * S, H).astype(mxu_dtype)   # MXU-input only -> bf16
    trg2d = trg.reshape(B * S, H).astype(jnp.float32)     # residual/LN stays f32

    # additive mask: 0 where attended, -1e10 where masked (kept f32; bf16 would
    # not represent -1e10 cleanly)
    mask_add = jnp.where(trg_mask == 0,
                         jnp.float32(-1e10), jnp.float32(0.0)).astype(jnp.float32)

    # fold 1/sqrt(head_dim) into the Q columns of the fused QKV projection
    inv_scale = 1.0 / math.sqrt(float(hd))
    qkv_scale = jnp.concatenate(
        [jnp.full((1, H), inv_scale, jnp.float32),
         jnp.ones((1, 2 * H), jnp.float32)], axis=1)
    wqkv = (params["wqkv"].astype(jnp.float32) * qkv_scale).astype(mxu_dtype)
    bqkv = (params["bqkv"].astype(jnp.float32) * qkv_scale)

    wo = params["wo"].astype(mxu_dtype)
    w1 = params["w1"].astype(mxu_dtype)
    w2 = params["w2"].astype(mxu_dtype)

    kernel = functools.partial(decoder_layer_kernel, n_heads)

    def rep(shape):                # grid-invariant (replicated) operand
        return pl.BlockSpec(shape, lambda i, _n=len(shape): (0,) * _n)

    grid = (B // Bt,)
    in_specs = [
        pl.BlockSpec((Bt * S, H), lambda i: (i, 0)),        # enc_src (flat, bf16)
        pl.BlockSpec((Bt * S, H), lambda i: (i, 0)),        # trg (flat, f32)
        pl.BlockSpec((Bt, S, S), lambda i: (i, 0, 0)),      # additive mask
        rep((H, 3 * H)), rep((1, 3 * H)),                   # Wqkv, bqkv
        rep((H, H)), rep((1, H)),                           # Wo, bo
        rep((1, H)), rep((1, H)),                           # ln1 gamma, beta
        rep((H, pf_dim)), rep((1, pf_dim)),                 # W1, b1
        rep((pf_dim, H)), rep((1, H)),                      # W2, b2
        rep((1, H)), rep((1, H)),                           # ln2 gamma, beta
    ]
    out_specs = [
        pl.BlockSpec((Bt * S, H), lambda i: (i, 0)),
        pl.BlockSpec((Bt, n_heads, S, S), lambda i: (i, 0, 0, 0)),
    ]
    out_shapes = [
        jax.ShapeDtypeStruct((B * S, H), jnp.float32),
        jax.ShapeDtypeStruct((B, n_heads, S, S), jnp.float32),
    ]

    out2d, attention = pl.pallas_call(
        kernel,
        grid=grid,
        in_specs=in_specs,
        out_specs=out_specs,
        out_shape=out_shapes,
        compiler_params=pltpu.CompilerParams(
            dimension_semantics=("parallel",),       # batch blocks are independent
            vmem_limit_bytes=32 * 1024 * 1024),
    )(enc2d, trg2d, mask_add,
      wqkv, bqkv, wo, params["bo"],
      params["g1"], params["beta1"],
      w1, params["b1"], w2, params["b2"],
      params["g2"], params["beta2"])

    return out2d.reshape(B, S, H), attention


def init_params(key, hid_dim, pf_dim):
    ks = jax.random.split(key, 12)
    s = 0.1
    wq = jax.random.normal(ks[0], (hid_dim, hid_dim), jnp.float32) * s
    bq = jax.random.normal(ks[1], (1, hid_dim), jnp.float32) * s
    wk = jax.random.normal(ks[2], (hid_dim, hid_dim), jnp.float32) * s
    bk = jax.random.normal(ks[3], (1, hid_dim), jnp.float32) * s
    wv = jax.random.normal(ks[4], (hid_dim, hid_dim), jnp.float32) * s
    bv = jax.random.normal(ks[5], (1, hid_dim), jnp.float32) * s
    p = {
        # fused QKV weight / bias: columns ordered [Q | K | V], each head-major
        "wqkv": jnp.concatenate([wq, wk, wv], axis=1),
        "bqkv": jnp.concatenate([bq, bk, bv], axis=1),
        "wo": jax.random.normal(ks[6], (hid_dim, hid_dim), jnp.float32) * s,
        "bo": jax.random.normal(ks[7], (1, hid_dim), jnp.float32) * s,
        "g1": jnp.ones((1, hid_dim), jnp.float32),
        "beta1": jnp.zeros((1, hid_dim), jnp.float32),
        "w1": jax.random.normal(ks[8], (hid_dim, pf_dim), jnp.float32) * s,
        "b1": jax.random.normal(ks[9], (1, pf_dim), jnp.float32) * s,
        "w2": jax.random.normal(ks[10], (pf_dim, hid_dim), jnp.float32) * s,
        "b2": jax.random.normal(ks[11], (1, hid_dim), jnp.float32) * s,
        "g2": jnp.ones((1, hid_dim), jnp.float32),
        "beta2": jnp.zeros((1, hid_dim), jnp.float32),
    }
    return p


if __name__ == "__main__":
    B, S, H = 2, 8, 32
    n_heads, pf_dim = 4, 64

    key = jax.random.PRNGKey(0)
    k_trg, k_enc, k_par = jax.random.split(key, 3)

    trg = jax.random.normal(k_trg, (B, S, H), jnp.float32)
    enc_src = jax.random.normal(k_enc, (B, S, H), jnp.float32)
    # causal target mask, broadcast over batch: [B, S, S] int32
    trg_mask = jnp.broadcast_to(
        jnp.tril(jnp.ones((S, S), jnp.int32)), (B, S, S)).astype(jnp.int32)

    params = init_params(k_par, H, pf_dim)

    out, attention = decoder_layer(trg, enc_src, trg_mask, params, n_heads)
    jax.block_until_ready(out)
    jax.block_until_ready(attention)

    assert out.shape == (B, S, H)
    assert attention.shape == (B, n_heads, S, S)
    assert bool(jnp.all(jnp.isfinite(out)))
    assert bool(jnp.all(jnp.isfinite(attention)))
    print("KERNEL_OK")
</pallas_src>

<mosaic_0001>
module attributes {stable_mosaic.version = 11 : i64} {
  func.func @decoder_layer_kernel(%arg0: i32, %arg1: memref<8x32xbf16, #tpu.memory_space<vmem>>, %arg2: memref<8x32xf32, #tpu.memory_space<vmem>>, %arg3: memref<1x8x8xf32, #tpu.memory_space<vmem>>, %arg4: memref<32x96xbf16, #tpu.memory_space<vmem>>, %arg5: memref<1x96xf32, #tpu.memory_space<vmem>>, %arg6: memref<32x32xbf16, #tpu.memory_space<vmem>>, %arg7: memref<1x32xf32, #tpu.memory_space<vmem>>, %arg8: memref<1x32xf32, #tpu.memory_space<vmem>>, %arg9: memref<1x32xf32, #tpu.memory_space<vmem>>, %arg10: memref<32x64xbf16, #tpu.memory_space<vmem>>, %arg11: memref<1x64xf32, #tpu.memory_space<vmem>>, %arg12: memref<64x32xbf16, #tpu.memory_space<vmem>>, %arg13: memref<1x32xf32, #tpu.memory_space<vmem>>, %arg14: memref<1x32xf32, #tpu.memory_space<vmem>>, %arg15: memref<1x32xf32, #tpu.memory_space<vmem>>, %arg16: memref<8x32xf32, #tpu.memory_space<vmem>>, %arg17: memref<1x4x8x8xf32, #tpu.memory_space<vmem>>) attributes {dimension_semantics = [#tpu.dimension_semantics<parallel>], iteration_bounds = array<i64: 2>, scalar_prefetch = 0 : i64, scratch_operands = 0 : i64, tpu.core_type = #tpu.core_type<tc>, window_params = [{transform_indices = @transform_0, window_bounds = array<i64: 8, 32>}, {transform_indices = @transform_1, window_bounds = array<i64: 8, 32>}, {transform_indices = @transform_2, window_bounds = array<i64: 1, 8, 8>}, {pipeline_mode = #tpu.pipeline_mode<synchronous>, transform_indices = @transform_3, window_bounds = array<i64: 32, 96>}, {pipeline_mode = #tpu.pipeline_mode<synchronous>, transform_indices = @transform_4, window_bounds = array<i64: 1, 96>}, {pipeline_mode = #tpu.pipeline_mode<synchronous>, transform_indices = @transform_5, window_bounds = array<i64: 32, 32>}, {pipeline_mode = #tpu.pipeline_mode<synchronous>, transform_indices = @transform_6, window_bounds = array<i64: 1, 32>}, {pipeline_mode = #tpu.pipeline_mode<synchronous>, transform_indices = @transform_7, window_bounds = array<i64: 1, 32>}, {pipeline_mode = #tpu.pipeline_mode<synchronous>, transform_indices = @transform_8, window_bounds = array<i64: 1, 32>}, {pipeline_mode = #tpu.pipeline_mode<synchronous>, transform_indices = @transform_9, window_bounds = array<i64: 32, 64>}, {pipeline_mode = #tpu.pipeline_mode<synchronous>, transform_indices = @transform_10, window_bounds = array<i64: 1, 64>}, {pipeline_mode = #tpu.pipeline_mode<synchronous>, transform_indices = @transform_11, window_bounds = array<i64: 64, 32>}, {pipeline_mode = #tpu.pipeline_mode<synchronous>, transform_indices = @transform_12, window_bounds = array<i64: 1, 32>}, {pipeline_mode = #tpu.pipeline_mode<synchronous>, transform_indices = @transform_13, window_bounds = array<i64: 1, 32>}, {pipeline_mode = #tpu.pipeline_mode<synchronous>, transform_indices = @transform_14, window_bounds = array<i64: 1, 32>}, {transform_indices = @transform_15, window_bounds = array<i64: 8, 32>}, {transform_indices = @transform_16, window_bounds = array<i64: 1, 4, 8, 8>}]} {
    %c0 = arith.constant 0 : index
    %c0_0 = arith.constant 0 : index
    %0 = vector.load %arg1[%c0, %c0_0] : memref<8x32xbf16, #tpu.memory_space<vmem>>, vector<8x32xbf16>
    %c0_1 = arith.constant 0 : index
    %c0_2 = arith.constant 0 : index
    %1 = vector.load %arg2[%c0_1, %c0_2] : memref<8x32xf32, #tpu.memory_space<vmem>>, vector<8x32xf32>
    %c0_3 = arith.constant 0 : index
    %c0_4 = arith.constant 0 : index
    %2 = vector.load %arg4[%c0_3, %c0_4] : memref<32x96xbf16, #tpu.memory_space<vmem>>, vector<32x96xbf16>
    %cst = arith.constant dense<0.000000e+00> : vector<8x96xf32>
    %3 = tpu.matmul %0, %2, %cst {dimension_numbers = #tpu.dot_dimension_numbers<[1], [0], [0], [1], [0, 0, 1, 1], [], []>} : vector<8x32xbf16>, vector<32x96xbf16>, vector<8x96xf32> -> vector<8x96xf32>
    %c0_5 = arith.constant 0 : index
    %c0_6 = arith.constant 0 : index
    %4 = vector.load %arg5[%c0_5, %c0_6] : memref<1x96xf32, #tpu.memory_space<vmem>>, vector<1x96xf32>
    %5 = vector.broadcast %4 : vector<1x96xf32> to vector<8x96xf32>
    %6 = arith.addf %3, %5 : vector<8x96xf32>
    %7 = vector.shape_cast %6 : vector<8x96xf32> to vector<1x8x12x8xf32>
    %8 = tpu.transpose %7, [0, 2, 1, 3] : vector<1x8x12x8xf32> -> vector<1x12x8x8xf32>
    %9 = vector.shape_cast %8 : vector<1x12x8x8xf32> to vector<1x3x4x8x8xf32>
    %10 = vector.extract_strided_slice %9 {offsets = [0, 0, 0, 0, 0], sizes = [1, 1, 4, 8, 8], strides = [1, 1, 1, 1, 1]} : vector<1x3x4x8x8xf32> to vector<1x1x4x8x8xf32>
    %11 = vector.shape_cast %10 : vector<1x1x4x8x8xf32> to vector<1x4x8x8xf32>
    %12 = vector.shape_cast %11 : vector<1x4x8x8xf32> to vector<4x8x8xf32>
    %13 = arith.truncf %12 : vector<4x8x8xf32> to vector<4x8x8xbf16>
    %14 = vector.extract_strided_slice %9 {offsets = [0, 1, 0, 0, 0], sizes = [1, 1, 4, 8, 8], strides = [1, 1, 1, 1, 1]} : vector<1x3x4x8x8xf32> to vector<1x1x4x8x8xf32>
    %15 = vector.shape_cast %14 : vector<1x1x4x8x8xf32> to vector<1x4x8x8xf32>
    %16 = vector.shape_cast %15 : vector<1x4x8x8xf32> to vector<4x8x8xf32>
    %17 = arith.truncf %16 : vector<4x8x8xf32> to vector<4x8x8xbf16>
    %18 = vector.extract_strided_slice %9 {offsets = [0, 2, 0, 0, 0], sizes = [1, 1, 4, 8, 8], strides = [1, 1, 1, 1, 1]} : vector<1x3x4x8x8xf32> to vector<1x1x4x8x8xf32>
    %19 = vector.shape_cast %18 : vector<1x1x4x8x8xf32> to vector<1x4x8x8xf32>
    %20 = vector.shape_cast %19 : vector<1x4x8x8xf32> to vector<4x8x8xf32>
    %21 = arith.truncf %20 : vector<4x8x8xf32> to vector<4x8x8xbf16>
    "tpu.trace_start"() <{level = 10 : i32, message = "gqd,gkd->gqk"}> : () -> ()
    %cst_7 = arith.constant dense<0.000000e+00> : vector<4x8x8xf32>
    %22 = tpu.matmul %13, %17, %cst_7 {dimension_numbers = #tpu.dot_dimension_numbers<[2], [2], [1], [1], [0, 0, 0, 1, 1, 1], [0], [0]>} : vector<4x8x8xbf16>, vector<4x8x8xbf16>, vector<4x8x8xf32> -> vector<4x8x8xf32>
    "tpu.trace_stop"() : () -> ()
    %23 = vector.shape_cast %22 : vector<4x8x8xf32> to vector<1x4x8x8xf32>
    %c0_8 = arith.constant 0 : index
    %c0_9 = arith.constant 0 : index
    %c0_10 = arith.constant 0 : index
    %24 = vector.load %arg3[%c0_8, %c0_9, %c0_10] : memref<1x8x8xf32, #tpu.memory_space<vmem>>, vector<1x8x8xf32>
    %25 = vector.shape_cast %24 : vector<1x8x8xf32> to vector<1x1x8x8xf32>
    %26 = vector.broadcast %25 : vector<1x1x8x8xf32> to vector<1x4x8x8xf32>
    %27 = arith.addf %23, %26 : vector<1x4x8x8xf32>
    %cst_11 = arith.constant dense<0xFF800000> : vector<1x4x8xf32>
    %28 = vector.multi_reduction <maximumf>, %27, %cst_11 [3] : vector<1x4x8x8xf32> to vector<1x4x8xf32>
    %29 = vector.shape_cast %28 : vector<1x4x8xf32> to vector<1x4x8x1xf32>
    %30 = vector.broadcast %29 : vector<1x4x8x1xf32> to vector<1x4x8x8xf32>
    %31 = arith.subf %27, %30 : vector<1x4x8x8xf32>
    %32 = math.exp %31 : vector<1x4x8x8xf32>
    %cst_12 = arith.constant dense<0.000000e+00> : vector<1x4x8xf32>
    %33 = vector.multi_reduction <add>, %32, %cst_12 [3] : vector<1x4x8x8xf32> to vector<1x4x8xf32>
    %34 = vector.shape_cast %33 : vector<1x4x8xf32> to vector<1x4x8x1xf32>
    %35 = tpu.reciprocal %34 {approx = true} : vector<1x4x8x1xf32> -> vector<1x4x8x1xf32>
    %36 = vector.broadcast %35 : vector<1x4x8x1xf32> to vector<1x4x8x8xf32>
    %37 = arith.mulf %32, %36 : vector<1x4x8x8xf32>
    %c0_13 = arith.constant 0 : index
    %c0_14 = arith.constant 0 : index
    %c0_15 = arith.constant 0 : index
    %c0_16 = arith.constant 0 : index
    %38 = vector.load %arg17[%c0_13, %c0_14, %c0_15, %c0_16] : memref<1x4x8x8xf32, #tpu.memory_space<vmem>>, vector<1x4x8x8xf32>
    tpu.vector_store %arg17[%c0_13, %c0_14, %c0_15, %c0_16], %37 {strides = array<i32>} : memref<1x4x8x8xf32, #tpu.memory_space<vmem>>, vector<1x4x8x8xf32>,
    %39 = vector.shape_cast %37 : vector<1x4x8x8xf32> to vector<4x8x8xf32>
    %40 = arith.truncf %39 : vector<4x8x8xf32> to vector<4x8x8xbf16>
    "tpu.trace_start"() <{level = 10 : i32, message = "gqk,gkd->gqd"}> : () -> ()
    %cst_17 = arith.constant dense<0.000000e+00> : vector<4x8x8xf32>
    %41 = tpu.matmul %40, %21, %cst_17 {dimension_numbers = #tpu.dot_dimension_numbers<[2], [1], [1], [2], [0, 0, 0, 1, 1, 2], [0], [0]>} : vector<4x8x8xbf16>, vector<4x8x8xbf16>, vector<4x8x8xf32> -> vector<4x8x8xf32>
    "tpu.trace_stop"() : () -> ()
    %42 = vector.shape_cast %41 : vector<4x8x8xf32> to vector<1x4x8x8xf32>
    %43 = tpu.transpose %42, [0, 2, 1, 3] : vector<1x4x8x8xf32> -> vector<1x8x4x8xf32>
    %44 = vector.shape_cast %43 : vector<1x8x4x8xf32> to vector<8x32xf32>
    %45 = arith.truncf %44 : vector<8x32xf32> to vector<8x32xbf16>
    %c0_18 = arith.constant 0 : index
    %c0_19 = arith.constant 0 : index
    %46 = vector.load %arg6[%c0_18, %c0_19] : memref<32x32xbf16, #tpu.memory_space<vmem>>, vector<32x32xbf16>
    %cst_20 = arith.constant dense<0.000000e+00> : vector<8x32xf32>
    %47 = tpu.matmul %45, %46, %cst_20 {dimension_numbers = #tpu.dot_dimension_numbers<[1], [0], [0], [1], [0, 0, 1, 1], [], []>} : vector<8x32xbf16>, vector<32x32xbf16>, vector<8x32xf32> -> vector<8x32xf32>
    %c0_21 = arith.constant 0 : index
    %c0_22 = arith.constant 0 : index
    %48 = vector.load %arg7[%c0_21, %c0_22] : memref<1x32xf32, #tpu.memory_space<vmem>>, vector<1x32xf32>
    %49 = vector.broadcast %48 : vector<1x32xf32> to vector<8x32xf32>
    %50 = arith.addf %47, %49 : vector<8x32xf32>
    %51 = arith.addf %1, %50 : vector<8x32xf32>
    %c0_23 = arith.constant 0 : index
    %c0_24 = arith.constant 0 : index
    %52 = vector.load %arg8[%c0_23, %c0_24] : memref<1x32xf32, #tpu.memory_space<vmem>>, vector<1x32xf32>
    %c0_25 = arith.constant 0 : index
    %c0_26 = arith.constant 0 : index
    %53 = vector.load %arg9[%c0_25, %c0_26] : memref<1x32xf32, #tpu.memory_space<vmem>>, vector<1x32xf32>
    %cst_27 = arith.constant dense<0.000000e+00> : vector<8xf32>
    %54 = vector.multi_reduction <add>, %51, %cst_27 [1] : vector<8x32xf32> to vector<8xf32>
    %55 = vector.shape_cast %54 : vector<8xf32> to vector<8x1xf32>
    %cst_28 = arith.constant 3.200000e+01 : f32
    %56 = vector.broadcast %cst_28 : f32 to vector<8x1xf32>
    %57 = arith.divf %55, %56 : vector<8x1xf32>
    %58 = vector.broadcast %57 : vector<8x1xf32> to vector<8x32xf32>
    %59 = arith.subf %51, %58 : vector<8x32xf32>
    %60 = arith.mulf %59, %59 : vector<8x32xf32>
    %cst_29 = arith.constant dense<0.000000e+00> : vector<8xf32>
    %61 = vector.multi_reduction <add>, %60, %cst_29 [1] : vector<8x32xf32> to vector<8xf32>
    %62 = vector.shape_cast %61 : vector<8xf32> to vector<8x1xf32>
    %cst_30 = arith.constant 3.200000e+01 : f32
    %63 = vector.broadcast %cst_30 : f32 to vector<8x1xf32>
    %64 = arith.divf %62, %63 : vector<8x1xf32>
    %65 = vector.broadcast %57 : vector<8x1xf32> to vector<8x32xf32>
    %66 = arith.subf %51, %65 : vector<8x32xf32>
    %cst_31 = arith.constant 9.99999974E-6 : f32
    %67 = vector.broadcast %cst_31 : f32 to vector<8x1xf32>
    %68 = arith.addf %64, %67 : vector<8x1xf32>
    %69 = math.rsqrt %68 : vector<8x1xf32>
    %70 = vector.broadcast %69 : vector<8x1xf32> to vector<8x32xf32>
    %71 = arith.mulf %66, %70 : vector<8x32xf32>
    %72 = vector.broadcast %52 : vector<1x32xf32> to vector<8x32xf32>
    %73 = arith.mulf %71, %72 : vector<8x32xf32>
    %74 = vector.broadcast %53 : vector<1x32xf32> to vector<8x32xf32>
    %75 = arith.addf %73, %74 : vector<8x32xf32>
    %76 = arith.truncf %75 : vector<8x32xf32> to vector<8x32xbf16>
    %c0_32 = arith.constant 0 : index
    %c0_33 = arith.constant 0 : index
    %77 = vector.load %arg10[%c0_32, %c0_33] : memref<32x64xbf16, #tpu.memory_space<vmem>>, vector<32x64xbf16>
    %cst_34 = arith.constant dense<0.000000e+00> : vector<8x64xf32>
    %78 = tpu.matmul %76, %77, %cst_34 {dimension_numbers = #tpu.dot_dimension_numbers<[1], [0], [0], [1], [0, 0, 1, 1], [], []>} : vector<8x32xbf16>, vector<32x64xbf16>, vector<8x64xf32> -> vector<8x64xf32>
    %c0_35 = arith.constant 0 : index
    %c0_36 = arith.constant 0 : index
    %79 = vector.load %arg11[%c0_35, %c0_36] : memref<1x64xf32, #tpu.memory_space<vmem>>, vector<1x64xf32>
    %80 = vector.broadcast %79 : vector<1x64xf32> to vector<8x64xf32>
    %81 = arith.addf %78, %80 : vector<8x64xf32>
    %cst_37 = arith.constant 0.000000e+00 : f32
    %82 = vector.broadcast %cst_37 : f32 to vector<8x64xf32>
    %83 = arith.maximumf %81, %82 : vector<8x64xf32>
    %84 = arith.truncf %83 : vector<8x64xf32> to vector<8x64xbf16>
    %c0_38 = arith.constant 0 : index
    %c0_39 = arith.constant 0 : index
    %85 = vector.load %arg12[%c0_38, %c0_39] : memref<64x32xbf16, #tpu.memory_space<vmem>>, vector<64x32xbf16>
    %cst_40 = arith.constant dense<0.000000e+00> : vector<8x32xf32>
    %86 = tpu.matmul %84, %85, %cst_40 {dimension_numbers = #tpu.dot_dimension_numbers<[1], [0], [0], [1], [0, 0, 1, 1], [], []>} : vector<8x64xbf16>, vector<64x32xbf16>, vector<8x32xf32> -> vector<8x32xf32>
    %c0_41 = arith.constant 0 : index
    %c0_42 = arith.constant 0 : index
    %87 = vector.load %arg13[%c0_41, %c0_42] : memref<1x32xf32, #tpu.memory_space<vmem>>, vector<1x32xf32>
    %88 = vector.broadcast %87 : vector<1x32xf32> to vector<8x32xf32>
    %89 = arith.addf %86, %88 : vector<8x32xf32>
    %90 = arith.addf %75, %89 : vector<8x32xf32>
    %c0_43 = arith.constant 0 : index
    %c0_44 = arith.constant 0 : index
    %91 = vector.load %arg14[%c0_43, %c0_44] : memref<1x32xf32, #tpu.memory_space<vmem>>, vector<1x32xf32>
    %c0_45 = arith.constant 0 : index
    %c0_46 = arith.constant 0 : index
    %92 = vector.load %arg15[%c0_45, %c0_46] : memref<1x32xf32, #tpu.memory_space<vmem>>, vector<1x32xf32>
    %cst_47 = arith.constant dense<0.000000e+00> : vector<8xf32>
    %93 = vector.multi_reduction <add>, %90, %cst_47 [1] : vector<8x32xf32> to vector<8xf32>
    %94 = vector.shape_cast %93 : vector<8xf32> to vector<8x1xf32>
    %cst_48 = arith.constant 3.200000e+01 : f32
    %95 = vector.broadcast %cst_48 : f32 to vector<8x1xf32>
    %96 = arith.divf %94, %95 : vector<8x1xf32>
    %97 = vector.broadcast %96 : vector<8x1xf32> to vector<8x32xf32>
    %98 = arith.subf %90, %97 : vector<8x32xf32>
    %99 = arith.mulf %98, %98 : vector<8x32xf32>
    %cst_49 = arith.constant dense<0.000000e+00> : vector<8xf32>
    %100 = vector.multi_reduction <add>, %99, %cst_49 [1] : vector<8x32xf32> to vector<8xf32>
    %101 = vector.shape_cast %100 : vector<8xf32> to vector<8x1xf32>
    %cst_50 = arith.constant 3.200000e+01 : f32
    %102 = vector.broadcast %cst_50 : f32 to vector<8x1xf32>
    %103 = arith.divf %101, %102 : vector<8x1xf32>
    %104 = vector.broadcast %96 : vector<8x1xf32> to vector<8x32xf32>
    %105 = arith.subf %90, %104 : vector<8x32xf32>
    %cst_51 = arith.constant 9.99999974E-6 : f32
    %106 = vector.broadcast %cst_51 : f32 to vector<8x1xf32>
    %107 = arith.addf %103, %106 : vector<8x1xf32>
    %108 = math.rsqrt %107 : vector<8x1xf32>
    %109 = vector.broadcast %108 : vector<8x1xf32> to vector<8x32xf32>
    %110 = arith.mulf %105, %109 : vector<8x32xf32>
    %111 = vector.broadcast %91 : vector<1x32xf32> to vector<8x32xf32>
    %112 = arith.mulf %110, %111 : vector<8x32xf32>
    %113 = vector.broadcast %92 : vector<1x32xf32> to vector<8x32xf32>
    %114 = arith.addf %112, %113 : vector<8x32xf32>
    %c0_52 = arith.constant 0 : index
    %c0_53 = arith.constant 0 : index
    %115 = vector.load %arg16[%c0_52, %c0_53] : memref<8x32xf32, #tpu.memory_space<vmem>>, vector<8x32xf32>
    tpu.vector_store %arg16[%c0_52, %c0_53], %114 {strides = array<i32>} : memref<8x32xf32, #tpu.memory_space<vmem>>, vector<8x32xf32>,
    return
  }
  func.func @transform_0(%arg0: i32) -> (i32, i32) {
    %c0_i32 = arith.constant 0 : i32
    %c0_i32_0 = arith.constant 0 : i32
    return %arg0, %c0_i32 : i32, i32
  }
  func.func @transform_1(%arg0: i32) -> (i32, i32) {
    %c0_i32 = arith.constant 0 : i32
    %c0_i32_0 = arith.constant 0 : i32
    return %arg0, %c0_i32 : i32, i32
  }
  func.func @transform_2(%arg0: i32) -> (i32, i32, i32) {
    %c0_i32 = arith.constant 0 : i32
    %c0_i32_0 = arith.constant 0 : i32
    %c0_i32_1 = arith.constant 0 : i32
    return %arg0, %c0_i32, %c0_i32_0 : i32, i32, i32
  }
  func.func @transform_3(%arg0: i32) -> (i32, i32) {
    %c0_i32 = arith.constant 0 : i32
    %c0_i32_0 = arith.constant 0 : i32
    %c0_i32_1 = arith.constant 0 : i32
    return %c0_i32, %c0_i32_0 : i32, i32
  }
  func.func @transform_4(%arg0: i32) -> (i32, i32) {
    %c0_i32 = arith.constant 0 : i32
    %c0_i32_0 = arith.constant 0 : i32
    %c0_i32_1 = arith.constant 0 : i32
    return %c0_i32, %c0_i32_0 : i32, i32
  }
  func.func @transform_5(%arg0: i32) -> (i32, i32) {
    %c0_i32 = arith.constant 0 : i32
    %c0_i32_0 = arith.constant 0 : i32
    %c0_i32_1 = arith.constant 0 : i32
    return %c0_i32, %c0_i32_0 : i32, i32
  }
  func.func @transform_6(%arg0: i32) -> (i32, i32) {
    %c0_i32 = arith.constant 0 : i32
    %c0_i32_0 = arith.constant 0 : i32
    %c0_i32_1 = arith.constant 0 : i32
    return %c0_i32, %c0_i32_0 : i32, i32
  }
  func.func @transform_7(%arg0: i32) -> (i32, i32) {
    %c0_i32 = arith.constant 0 : i32
    %c0_i32_0 = arith.constant 0 : i32
    %c0_i32_1 = arith.constant 0 : i32
    return %c0_i32, %c0_i32_0 : i32, i32
  }
  func.func @transform_8(%arg0: i32) -> (i32, i32) {
    %c0_i32 = arith.constant 0 : i32
    %c0_i32_0 = arith.constant 0 : i32
    %c0_i32_1 = arith.constant 0 : i32
    return %c0_i32, %c0_i32_0 : i32, i32
  }
  func.func @transform_9(%arg0: i32) -> (i32, i32) {
    %c0_i32 = arith.constant 0 : i32
    %c0_i32_0 = arith.constant 0 : i32
    %c0_i32_1 = arith.constant 0 : i32
    return %c0_i32, %c0_i32_0 : i32, i32
  }
  func.func @transform_10(%arg0: i32) -> (i32, i32) {
    %c0_i32 = arith.constant 0 : i32
    %c0_i32_0 = arith.constant 0 : i32
    %c0_i32_1 = arith.constant 0 : i32
    return %c0_i32, %c0_i32_0 : i32, i32
  }
  func.func @transform_11(%arg0: i32) -> (i32, i32) {
    %c0_i32 = arith.constant 0 : i32
    %c0_i32_0 = arith.constant 0 : i32
    %c0_i32_1 = arith.constant 0 : i32
    return %c0_i32, %c0_i32_0 : i32, i32
  }
  func.func @transform_12(%arg0: i32) -> (i32, i32) {
    %c0_i32 = arith.constant 0 : i32
    %c0_i32_0 = arith.constant 0 : i32
    %c0_i32_1 = arith.constant 0 : i32
    return %c0_i32, %c0_i32_0 : i32, i32
  }
  func.func @transform_13(%arg0: i32) -> (i32, i32) {
    %c0_i32 = arith.constant 0 : i32
    %c0_i32_0 = arith.constant 0 : i32
    %c0_i32_1 = arith.constant 0 : i32
    return %c0_i32, %c0_i32_0 : i32, i32
  }
  func.func @transform_14(%arg0: i32) -> (i32, i32) {
    %c0_i32 = arith.constant 0 : i32
    %c0_i32_0 = arith.constant 0 : i32
    %c0_i32_1 = arith.constant 0 : i32
    return %c0_i32, %c0_i32_0 : i32, i32
  }
  func.func @transform_15(%arg0: i32) -> (i32, i32) {
    %c0_i32 = arith.constant 0 : i32
    %c0_i32_0 = arith.constant 0 : i32
    return %arg0, %c0_i32 : i32, i32
  }
  func.func @transform_16(%arg0: i32) -> (i32, i32, i32, i32) {
    %c0_i32 = arith.constant 0 : i32
    %c0_i32_0 = arith.constant 0 : i32
    %c0_i32_1 = arith.constant 0 : i32
    %c0_i32_2 = arith.constant 0 : i32
    return %arg0, %c0_i32, %c0_i32_0, %c0_i32_1 : i32, i32, i32, i32
  }
}

</mosaic_0001>

<bundles_post_ra>
// kernel: tpu_custom_call.1
= control target key start
LH: loop header
LB: loop body
LE: loop exit
PB: predicated region body
PF: predicated region fallthrough
CT: control target
= control target key end

     0   :  { %s3423_s0 = inlined_call_operand.hbm [shape: bf16[16,32], index: 0, kind: input, shape index: {}]   ;;  %s3424_s1 = inlined_call_operand.vmem [shape: f32[16,32], index: 1, kind: input, shape index: {}]   ;;  %s3425_s2 = inlined_call_operand.vmem [shape: f32[2,8,8], index: 2, kind: input, shape index: {}]   ;;  %s3426_s3 = inlined_call_operand.vmem [shape: bf16[32,96], index: 3, kind: input, shape index: {}]   ;;  %s3427_s4 = inlined_call_operand.hbm [shape: f32[1,96], index: 4, kind: input, shape index: {}]   ;;  %s3428_s5 = inlined_call_operand.hbm [shape: bf16[32,32], index: 5, kind: input, shape index: {}]   ;;  %s3429_s6 = inlined_call_operand.hbm [shape: f32[1,32], index: 6, kind: input, shape index: {}]   ;;  %s3430_s7 = inlined_call_operand.hbm [shape: f32[1,32], index: 7, kind: input, shape index: {}]   ;;  %s3431_s8 = inlined_call_operand.hbm [shape: f32[1,32], index: 8, kind: input, shape index: {}]   ;;  %s3432_s9 = inlined_call_operand.vmem [shape: bf16[32,64], index: 9, kind: input, shape index: {}]   ;;  %s3433_s10 = inlined_call_operand.vmem [shape: f32[1,64], index: 10, kind: input, shape index: {}]   ;;  %s3434_s11 = inlined_call_operand.vmem [shape: bf16[64,32], index: 11, kind: input, shape index: {}]   ;;  %s3435_s12 = inlined_call_operand.vmem [shape: f32[1,32], index: 12, kind: input, shape index: {}]   ;;  %s3436_s13 = inlined_call_operand.vmem [shape: f32[1,32], index: 13, kind: input, shape index: {}]   ;;  %s3437_s14 = inlined_call_operand.vmem [shape: f32[1,32], index: 14, kind: input, shape index: {}]   ;;  %s3438_s15 = inlined_call_operand.hbm [shape: f32[16,32], index: 15, kind: output, shape index: {0}]   ;;  %s3439_s16 = inlined_call_operand.hbm [shape: f32[2,4,8,8], index: 16, kind: output, shape index: {1}]  }
   0x1   :  { %3450 = sst [smem:[#allocation26_spill]] %s3423_s0 }
   0x2   :  { %3451 = sst [smem:[#allocation27_spill]] %s3427_s4 }
   0x3   :  { %3452 = sst [smem:[#allocation28_spill]] %s3428_s5 }
   0x4   :  { %3453 = sst [smem:[#allocation29_spill]] %s3429_s6 }
   0x5   :  { %3454 = sst [smem:[#allocation30_spill]] %s3430_s7 }
   0x6   :  { %3455 = sst [smem:[#allocation31_spill]] %s3431_s8 }
   0x7   :  { %3456 = sst [smem:[#allocation32_spill]] %s3437_s14 }
   0x8   :  { %3457 = sst [smem:[#allocation33_spill]] %s3438_s15 }
   0x9   :  { %22 = vsyncpa [#allocation3], 0 }
   0xa   :  { %24 = vsyncpa [#allocation3 + $0x1], 0 }
   0xb   :  { %25 = vsyncpa [#allocation6], 0 }
   0xc   :  { %26 = vsyncpa [#allocation9], 0 }
   0xd   :  { %27 = vsyncpa [#allocation12], 0 }
   0xe   :  { %28 = vsyncpa [#allocation4], 0 }
   0xf   :  { %30 = vsyncpa [#allocation4 + $0x1], 0 }
  0x10   :  { %31 = vsyncpa [#allocation15], 0 }
  0x11   :  { %33 = vsyncpa [#allocation15 + $0x1], 0  ;;  %s2959_s21 = smov 0   ;;  %s2961_s22 = smov 0  }
  0x12   :  { %s2963_s23 = smov 0   ;;  %s2965_s24 = smov 0  }
  0x13 LB: > { %3458 = sst [smem:[#allocation22_spill]] %s2839_s23  ;;  %s2845_s25 = smov [#allocation5]   ;;  %s2843_s24 = sphi %s2965_s24, %s3490_s24   ;;  %s2839_s23 = sphi %s2963_s23, %s3492_s23   ;;  %s2835_s22 = sphi %s2961_s22, %s3494_s22   ;;  %s2831_s21 = sphi %s2959_s21, %s3493_s21  }
  0x14   : > { %3459 = sst [smem:[#allocation23_spill]] %s2843_s24  ;;  %s442_s26 = sshll.u32 %s2845_s25, 4  ;;  %s443_s26 = int_to_ptr.vmem [resolvable:$true] %s442_s26 }
  0x15   : > { %s2980_s27 = sadd.s32 4294967295, %s2843_s24   ;;  %p2242_p0 = scmp.ge.s32.totalorder %s2843_s24, 1 }
  0x16   : > { %p3442_p1 = scmp.eq.s32.totalorder %s2980_s27, 0  ;;  %p426_p2 = scmp.lt.s32.totalorder %s2843_s24, 3 }
  0x17   : > { %s2846_s29 = smov [#allocation8]   ;;  %s2847_s0 = smov [#allocation7]  }
  0x18   : > { %p2985_p3 = pnand %p2242_p0, %p426_p2  ;;  %s466_s30 = sshll.u32 %s2846_s29, 4  ;;  %s467_s30 = int_to_ptr.vmem [resolvable:$true] %s466_s30 }
  0x19   : > { %s452_s17 = sshll.u32 %s2847_s0, 4  ;;  %s2590_s20 = scalar_lea.vmem %s443_s26, 16  ;;  %s2998_s17 = int_to_ptr.vmem [resolvable:$true] %s452_s17 }
  0x1a   : > { %s3460_s28 = scalar_select %p2985_p3, 1, 0 }
  0x1b   : > { %p2452_p5 = pneg %p2985_p3  ;;  %p2591_p8 = scmp.ne.s32.totalorder %s443_s26, %s2590_s20 }
  0x1c   : > { %s2597_s25 = scalar_lea.vmem %s443_s26, 32  ;;  %p2598_p11 = scmp.lt.s32.totalorder %s443_s26, %s443_s26 }
  0x1d   : > { %p2994_p6 = pnand %p2452_p5, %p3442_p1  ;;  %p2599_p12 = scmp.lt.s32.totalorder %s2597_s25, %s2590_s20 }
  0x1f   : > { %p3002_p7 = pneg %p2994_p6  ;;  %p2600_p13 = por %p2599_p12, %p2598_p11 }
  0x21   : > { %p2593_p9 = pnand %p2591_p8, %p3002_p7 }
  0x23   : > { %p2594_p10 = pneg %p2593_p9 }
  0x25   : > { %p2601_p0 = pnand %p2600_p13, %p2594_p10 }
  0x27   : > { %2604 = shalt.err (!%p2601_p0)
}
  0x28   : > { %s3463_s4 = sld [smem:[#allocation27_spill]]  ;;  %s2616_s15 = scalar_lea.vmem %s467_s30, 16 }
  0x29   : > { %p2617_p2 = scmp.ne.s32.totalorder %s467_s30, %s2616_s15  ;;  %s2623_s14 = scalar_lea.vmem %s467_s30, 32 }
  0x2a   : > { %p2624_p8 = scmp.lt.s32.totalorder %s467_s30, %s467_s30  ;;  %p2625_p9 = scmp.lt.s32.totalorder %s2623_s14, %s2616_s15 }
  0x2b   : > { %p2619_p5 = pnand %p2617_p2, %p3002_p7 }
  0x2c   : > { %p2626_p1 = por %p2625_p9, %p2624_p8 }
  0x2d   : > { %p2620_p4 = pneg %p2619_p5 }
  0x2e   : > { %2455 = dma.hbm_to_vmem [thread:$0]  (!%p2994_p6), %s3463_s4, 16, %s443_s26, [#allocation6]  }
  0x2f   : > { %p2627_p3 = pnand %p2626_p1, %p2620_p4 }
  0x31   : > { %2630 = shalt.err (!%p2627_p3)
}
  0x32   : > { %s3464_s6 = sld [smem:[#allocation29_spill]]  ;;  %s2642_s26 = scalar_lea.vmem %s2998_s17, 256 }
  0x33   : > { %p2643_p10 = scmp.ne.s32.totalorder %s2998_s17, %s2642_s26  ;;  %p2650_p13 = scmp.lt.s32.totalorder %s2998_s17, %s2998_s17 }
  0x34   : > { %p2651_p0 = scmp.lt.s32.totalorder %s2642_s26, %s2642_s26 }
  0x35   : > { %p2645_p11 = pnand %p2643_p10, %p3002_p7 }
  0x36   : > { %p2652_p1 = por %p2651_p0, %p2650_p13 }
  0x37   : > { %p2646_p12 = pneg %p2645_p11 }
  0x38   : > { %2461 = dma.hbm_to_vmem [thread:$0]  (!%p2994_p6), %s3464_s6, 16, %s467_s30, [#allocation9]  }
  0x39   : > { %p2653_p3 = pnand %p2652_p1, %p2646_p12 }
  0x3b   : > { %2656 = shalt.err (!%p2653_p3)
}
  0x3c   : > { %s2848_s14 = smov 64   ;;  %s2849_s15 = smov 4  }
  0x3d   : > { %s3465_s5 = sld [smem:[#allocation28_spill]]  ;;  %s2850_s30 = smov [#allocation10]  }
  0x3e   : > { %s477_s20 = sshll.u32 %s2850_s30, 4  ;;  %s2851_s25 = smov [#allocation11]   ;;  %s478_s20 = int_to_ptr.vmem [resolvable:$true] %s477_s20 }
  0x3f   : > { %s488_s4 = sshll.u32 %s2851_s25, 4  ;;  %s2668_s6 = scalar_lea.vmem %s478_s20, 16  ;;  %s489_s4 = int_to_ptr.vmem [resolvable:$true] %s488_s4 }
  0x40   : > { %p2669_p4 = scmp.ne.s32.totalorder %s478_s20, %s2668_s6  ;;  %s2675_s26 = scalar_lea.vmem %s478_s20, 32 }
  0x41   : > { %p2676_p8 = scmp.lt.s32.totalorder %s478_s20, %s478_s20  ;;  %p2677_p9 = scmp.lt.s32.totalorder %s2675_s26, %s2668_s6 }
  0x42   : > { %p2671_p2 = pnand %p2669_p4, %p3002_p7 }
  0x43   : > { %2458 = dma.hbm_to_vmem [thread:$0]  (!%p2994_p6), %s3465_s5, 256, %s2998_s17, [#allocation6], %s2848_s14, %s2848_s14, %s2849_s15  }
  0x44   : > { %p2672_p5 = pneg %p2671_p2  ;;  %p2678_p10 = por %p2677_p9, %p2676_p8 }
  0x46   : > { %p2679_p11 = pnand %p2678_p10, %p2672_p5 }
  0x48   : > { %2682 = shalt.err (!%p2679_p11)
}
  0x49   : > { %s3466_s7 = sld [smem:[#allocation30_spill]]  ;;  %s2694_s14 = scalar_lea.vmem %s489_s4, 16 }
  0x4a   : > { %p2695_p12 = scmp.ne.s32.totalorder %s489_s4, %s2694_s14  ;;  %s2701_s15 = scalar_lea.vmem %s489_s4, 32 }
  0x4b   : > { %p2702_p1 = scmp.lt.s32.totalorder %s489_s4, %s489_s4  ;;  %p2703_p3 = scmp.lt.s32.totalorder %s2701_s15, %s2694_s14 }
  0x4c   : > { %p2697_p13 = pnand %p2695_p12, %p3002_p7 }
  0x4d   : > { %p2704_p4 = por %p2703_p3, %p2702_p1 }
  0x4e   : > { %p2698_p0 = pneg %p2697_p13 }
  0x4f   : > { %2464 = dma.hbm_to_vmem [thread:$0]  (!%p2994_p6), %s3466_s7, 16, %s478_s20, [#allocation9]  }
  0x50   : > { %p2705_p2 = pnand %p2704_p4, %p2698_p0 }
  0x52   : > { %2708 = shalt.err (!%p2705_p2)
}
  0x53   : > { %s3467_s8 = sld [smem:[#allocation31_spill]]  ;;  %s2241_s19 = sadd.s32 4294967294, %s2843_s24  }
  0x54   : > { %s3048_s18 = sadd.s32 1, %s2843_s24   ;;  %s46_s30 = sadd.s32 1, %s2839_s23 }
  0x55   : > { %3468 = sst [smem:[#allocation24_spill]] %s3048_s18  ;;  %s43_s20 = ssub.s32 %s2843_s24, %s3048_s18 }
  0x56   : > { %p53_p7 = scmp.ne.s32.totalorder %s2839_s23, %s2835_s22  ;;  %p44_p5 = scmp.eq.s32.totalorder %s43_s20, 0 }
  0x57   : > { %p54_p8 = scmp.eq.s32.totalorder %s2843_s24, 0  ;;  %p59_p9 = scmp.ne.s32.totalorder %s2835_s22, %s2831_s21 }
  0x58   : > { %p387_p10 = scmp.eq.s32.totalorder %s2980_s27, 1  ;;  %p3470_p12 = scmp.eq.s32.totalorder %s2980_s27, 0 }
  0x59   : > { %2467 = dma.hbm_to_vmem [thread:$0]  (!%p2994_p6), %s3467_s8, 16, %s489_s4, [#allocation12]  }
  0x5a   : > { %s3060_s25 = scalar_select %p44_p5, %s2839_s23, %s46_s30  }
  0x5b   : > { %p55_p11 = por %p54_p8, %p53_p7  ;;  %p3064_p13 = por %p3470_p12, %p59_p9 }
  0x5c   : > { %3469 = sst [smem:[#allocation25_spill]] %s3060_s25  ;;  %p3068_p6 = por %p387_p10, %p53_p7 }
  0x5d   : > { %s3471_s26 = scalar_select %p3064_p13, 1, 0 }
  0x5e   : > { %s3472_s4 = scalar_select %p3068_p6, 1, 0 }
  0x5f   : > { %p393_p0 = scmp.eq.s32.totalorder %s2241_s19, 1  ;;  %p2484_p1 = scmp.lt.s32.totalorder %s2843_s24, 2 }
  0x60   : > { %s517_s29 = sand.u32 1, %s2839_s23   ;;  %s2250_s15 = sshll.u32 %s2843_s24, 6 }
  0x61   : > { %p3074_p3 = por %p393_p0, %p59_p9  ;;  %s2249_s14 = sshll.u32 %s517_s29, 2 }
  0x62   : > { %s3474_s30 = sld [smem:[#allocation26_spill]]  ;;  %s521_s5 = scalar_lea.vmem [#allocation2], %s2249_s14 }
  0x63   : > { %s3473_s17 = scalar_select %p3074_p3, 1, 0 }
  0x64   : > { %s528_s7 = sshll.u32 %s521_s5, 4  ;;  %p3084_p4 = pnand %p2484_p1, %p55_p11  ;;  %s529_s7 = int_to_ptr.vmem [resolvable:$true] %s528_s7 }
  0x65   : > { %s518_s8 = scalar_lea.sflag [#allocation3], %s517_s29 }
  0x66   : > { %p2711_p7 = pneg %p3084_p4 }
  0x68   : > { %s3082_s20 = scalar_lea.hbm %s3474_s30, %s2250_s15  ;;  %s2714_s0 = scalar_lea.hbm %s3474_s30, 128 }
  0x69   : > { %s2709_s25 = scalar_lea.hbm %s3082_s20, 64  ;;  %p2715_p9 = scmp.lt.s32.totalorder %s3082_s20, %s3474_s30 }
  0x6a   : > { %p2710_p2 = scmp.ne.s32.totalorder %s3082_s20, %s2709_s25  ;;  %p2716_p10 = scmp.lt.s32.totalorder %s2714_s0, %s2709_s25 }
  0x6c   : > { %p2712_p5 = pnand %p2711_p7, %p2710_p2  ;;  %p2717_p11 = por %p2716_p10, %p2715_p9 }
  0x6e   : > { %p2713_p8 = pneg %p2712_p5 }
  0x70   : > { %p2718_p12 = pnand %p2717_p11, %p2713_p8 }
  0x72   : > { %2721 = shalt.err (!%p2718_p12)
}
  0x73   : > { %s2722_s5 = scalar_lea.vmem %s529_s7, 64  ;;  %s2852_s29 = smov [#allocation2]  }
  0x74   : > { %p2723_p0 = scmp.ne.s32.totalorder %s529_s7, %s2722_s5  ;;  %s2727_s18 = sshll.u32 %s2852_s29, 4  ;;  %s2728_s18 = int_to_ptr.vmem [resolvable:$false] %s2727_s18 }
  0x75   : > { %s2729_s24 = scalar_lea.vmem %s2728_s18, 128  ;;  %p2730_p2 = scmp.lt.s32.totalorder %s529_s7, %s2728_s18 }
  0x76   : > { %p2725_p1 = pnand %p2723_p0, %p2711_p7  ;;  %p2731_p5 = scmp.lt.s32.totalorder %s2729_s24, %s2722_s5 }
  0x78   : > { %p2726_p3 = pneg %p2725_p1  ;;  %p2732_p6 = por %p2731_p5, %p2730_p2 }
  0x7a   : > { %p2733_p13 = pnand %p2732_p6, %p2726_p3 }
  0x7c   : > { %2736 = shalt.err (!%p2733_p13)
}
  0x7d   : > { %2471 = dma.hbm_to_vmem [thread:$0]  (!%p3084_p4), %s3082_s20, 64, %s529_s7, %s518_s8  }
  0x7e   : > { %p3476_p8 = scmp.ne.s32.totalorder %s3460_s28, 0 }
  0x7f   : > { %s3105_s23 = sand.u32 (!%p3476_p8), 1, %s2835_s22   ;;  %p3477_p7 = scmp.ne.s32.totalorder (!%p3476_p8), %s3471_s26, 0 }
  0x80   : > { %551 = sbr.rel (%p3476_p8) target bundleno = 2617 (0xa39), region = 80  ;;  %s2252_s25 = sshll.u32 (!%p3476_p8), %s3105_s23, 2 }
  0x81   : > { %s554_s15 = scalar_lea.sflag (!%p3476_p8), [#allocation3], %s3105_s23  ;;  %s557_s18 = scalar_lea.vmem (!%p3476_p8), [#allocation2], %s2252_s25 }
  0x85   : > { %2806 = dma.done.wait (%p3477_p7), %s554_s15, 64  }
  0x86   : > { %2808 = vsyncadd (%p3477_p7), %s554_s15, 4294967232  ;;  %p3478_p13 = scmp.eq.s32.totalorder %s2980_s27, 0 }
  0x88   : > { %2810 = dma.done.wait (%p3478_p13), [#allocation6], 272   ;;  %p3479_p6 = pmov %p3478_p13 }
  0x8a   : > { %2812 = vsyncadd (%p3479_p6), [#allocation6], 4294967024  ;;  %p3480_p3 = pmov %p3479_p6 }
  0x8c   : > { %2814 = dma.done.wait (%p3480_p3), [#allocation9], 32   ;;  %p3481_p4 = pmov %p3480_p3 }
  0x8d   : > { %p3482_p9 = pmov %p3480_p3 }
  0x8e   : > { %2816 = vsyncadd (%p3481_p4), [#allocation9], 4294967264 }
  0x8f   : > { %2818 = dma.done.wait (%p3482_p9), [#allocation12], 16   ;;  %p3483_p10 = pmov %p3480_p3 }
  0x90   : > { %v2853_v0 = vmov 0.0   ;;  %vm2854_vm0 = vmmov 0   ;;  %v2549_v1 = vld [vmem:[%s3426_s3 + $0x8] sm:$0xff]   ;;  %v2550_v2 = vld [vmem:[%s3426_s3] sm:$0xff]   ;;  %vm673_vm1 = vcmask 261120   ;;  %s2855_s26 = smov 80   ;;  %v756_v12 = vlaneseq }
  0x91   : > { %2820 = vsyncadd (%p3483_p10), [#allocation12], 4294967280  ;;  %2342 = vmatprep.subr.bf16.mxu0 %v2853_v0  ;;  %2346 = vmatprep.mubr.msk.bf16.mxu0 %vm2854_vm0, %v2853_v0  ;;  %v648_v3 = vld [vmem:[%s557_s18] sm:$0xf]  ;;  %v2262_v4 = vld [vmem:[#allocation5] ss:$0 sm:$0xff] }
  0x92   : > { %2350 = vmatprep.subr.bf16.mxu1 %v2853_v0  ;;  %2352 = vmatprep.mubr.msk.bf16.mxu1 %vm2854_vm0, %v2853_v0  ;;  %s2856_s20 = smov 96   ;;  %s2857_s19 = smov 72   ;;  %v2862_v10 = vmov 1983009808   ;;  %v2863_v13 = vmov 1934713408  }
  0x93   : > { %2343 = vmatpush3.bf16.msra.mxu0 %v2549_v1  ;;  %s2858_s6 = smov 88   ;;  %s2859_s0 = smov 112   ;;  %v754_v11 = vunpack.c.l.s4 %v2862_v10  ;;  %v818_v14 = vunpack.c.l.s4 %v2863_v13  ;;  %v757_v16 = vshrl.u32 %v756_v12, 7  ;;  %vm1171_vm2 = vcmask 64512  }
  0x94   : > { %2344 = vmatprep.subr.bf16.mxu0 %v2853_v0  ;;  %s2860_s14 = smov 120   ;;  %s2861_s5 = smov 104   ;;  %vm1416_vm3 = vcmask 1043456   ;;  %vm1747_vm4 = vcmask 130048   ;;  %vm1749_vm5 = vcmask 195584   ;;  %vm1957_vm6 = vcmask 523264  }
  0x95   : > { %v755_v15 = vunpack.c.0.s8 %v754_v11  ;;  %v819_v19 = vunpack.c.0.s8 %v818_v14  ;;  %p639_p11 = scmp.lt.s32.totalorder %s2980_s27, 1  ;;  %s2864_s8 = smov 56  }
  0x96   : > { %s2865_s24 = smov 64   ;;  %s2866_s28 = smov 48  }
  0x97   : > { %2345 = vmatpush3.bf16.msra.mxu0 %v2550_v2  ;;  %v3151_v20 = vsub.s32 %v755_v15, %v757_v16  ;;  %v3153_v27 = vsub.s32 %v819_v19, %v757_v16  ;;  %s3211_s29 = scalar_select %p639_p11, %s2980_s27, 1 }
  0x98   : > { %2356 = vmatprep.subr.bf16.mxu0 %v2853_v0  ;;  %p3484_p0 = scmp.ne.s32.totalorder %s3472_s4, 0 }
  0x99   : > { %s2260_s25 = sshll.u32 %s3211_s29, 3 }
  0x9a   : > { %2347 = vmatmul.mubr.msk.bf16.vlgmr.msra.gmra.mxu0 %vm673_vm1, %v648_v3  ;;  %s646_s7 = scalar_lea.vmem %s3425_s2, %s2260_s25  ;;  %s642_s18 = scalar_lea.vmem %s3424_s1, %s2260_s25 }
  0x9b   : > { %2358 = vmatprep.mubr.msk.bf16.mxu0 %vm2854_vm0, %v2853_v0 }
 0x15a   : > { %v711_v5 = vpop.f32.mrf.mxu0 }
 0x15b   : > { %v3142_v6 = vadd.f32 %v2262_v4, %v711_v5 }
 0x15c   : > { %v2348_v7 = vpop.f32.mrf.mxu0 }
 0x15d   : > { %733 = vrot.lane.b32.xlu1 %v3142_v6, %s2855_s26  ;;  %727 = vrot.lane.b32.xlu0 %v3142_v6, %s2856_s20  ;;  %s2867_s26 = smov 40   ;;  %s2259_s20 = sshll.u32 %s3105_s23, 5 }
 0x15e   : > { %v714_v8 = vpop.f32.mrf.mxu0 }
 0x160   : > { %v2349_v9 = vpop.f32.mrf.mxu0 }
 0x161   : > { %736 = vrot.lane.b32.xlu1 %v3142_v6, %s2857_s19  ;;  %730 = vrot.lane.b32.xlu0 %v3142_v6, %s2858_s6  ;;  %s3250_s19 = scalar_lea.vmem [#allocation14], %s2259_s20  ;;  %s2868_s6 = smov 16  }
 0x165   : > { %721 = vrot.lane.b32.xlu1 %v3142_v6, %s2859_s0  ;;  %718 = vrot.lane.b32.xlu0 %v3142_v6, %s2860_s14  ;;  %s2869_s0 = smov 8   ;;  %s2870_s14 = smov 24  }
 0x169   : > { %724 = vrot.lane.b32.xlu0 %v3142_v6, %s2861_s5  ;;  %s2871_s5 = smov [#allocation14]  }
 0x16a   : > { %s2741_s15 = sshll.u32 %s2871_s5, 4  ;;  %s2742_s15 = int_to_ptr.vmem [resolvable:$false] %s2741_s15 }
 0x1cf   : > { %v734_v17 = vpop.permute.xlu1 %733  ;;  %v728_v18 = vpop.permute.xlu0 %727 }
 0x1d0   : > { %v783_v21 = vcombine.low %v728_v18, %v734_v17  ;;  %v784_v22 = vcombine.high %v728_v18, %v734_v17 }
 0x1d2   : > { %v791_v28 = vrot.slane %v783_v21, %v3151_v20  ;;  %v798_v29 = vrot.slane %v784_v22, %v3151_v20 }
 0x1d3   : > { %v737_v23 = vpop.permute.xlu1 %736  ;;  %v731_v24 = vpop.permute.xlu0 %730 }
 0x1d4   : > { %v799_v25 = vcombine.low %v731_v24, %v737_v23  ;;  %v800_v26 = vcombine.high %v731_v24, %v737_v23 }
 0x1d6   : > { %v807_v30 = vrot.slane %v799_v25, %v3151_v20  ;;  %v814_v31 = vrot.slane %v800_v26, %v3151_v20 }
 0x1d7   : > { %v719_v32 = vpop.permute.xlu0 %718  ;;  %v722_v37 = vpop.permute.xlu1 %721 }
 0x1d8   : > { %v847_v33 = vcombine.low %v791_v28, %v807_v30  ;;  %v848_v34 = vcombine.high %v791_v28, %v807_v30  ;;  %v863_v35 = vcombine.low %v798_v29, %v814_v31  ;;  %v864_v36 = vcombine.high %v798_v29, %v814_v31 }
 0x1d9   : > { %v751_v42 = vcombine.low %v3142_v6, %v722_v37  ;;  %v752_v43 = vcombine.high %v3142_v6, %v722_v37 }
 0x1da   : > { %v855_v38 = vrot.slane %v847_v33, %v3153_v27  ;;  %v862_v39 = vrot.slane %v848_v34, %v3153_v27  ;;  %v871_v40 = vrot.slane %v863_v35, %v3153_v27  ;;  %v878_v41 = vrot.slane %v864_v36, %v3153_v27 }
 0x1db   : > { %v725_v44 = vpop.permute.xlu0 %724  ;;  %v759_v55 = vrot.slane %v751_v42, %v3151_v20  ;;  %v766_v56 = vrot.slane %v752_v43, %v3151_v20 }
 0x1dc   : > { %v2267_v45 = vcombine.low %v855_v38, %v862_v39  ;;  %v2269_v46 = vcombine.high %v855_v38, %v862_v39  ;;  %v2271_v47 = vcombine.low %v871_v40, %v878_v41  ;;  %v2273_v48 = vcombine.high %v871_v40, %v878_v41 }
 0x1dd   : > { %v767_v49 = vcombine.low %v719_v32, %v725_v44  ;;  %v768_v50 = vcombine.high %v719_v32, %v725_v44 }
 0x1de   : > { %v970_v51 = vrot.slane %v2267_v45, %v3151_v20  ;;  %v986_v52 = vrot.slane %v2269_v46, %v3151_v20  ;;  %v1002_v53 = vrot.slane %v2271_v47, %v3151_v20  ;;  %v1018_v54 = vrot.slane %v2273_v48, %v3151_v20 }
 0x1df   : > { %v775_v57 = vrot.slane %v767_v49, %v3151_v20  ;;  %v782_v58 = vrot.slane %v768_v50, %v3151_v20 }
 0x1e0   : > { %v1035_v59 = vcombine.low %v970_v51, %v986_v52  ;;  %v1067_v60 = vcombine.low %v1002_v53, %v1018_v54  ;;  %v1036_v4 = vcombine.high %v970_v51, %v986_v52  ;;  %v1068_v5 = vcombine.high %v1002_v53, %v1018_v54  ;;  %v1356_v51 = vld [vmem:[%s646_s7] sm:$0xff] }
 0x1e1   : > { %v815_v61 = vcombine.low %v759_v55, %v775_v57  ;;  %v816_v62 = vcombine.high %v759_v55, %v775_v57  ;;  %v831_v63 = vcombine.low %v766_v56, %v782_v58  ;;  %v832_v1 = vcombine.high %v766_v56, %v782_v58 }
 0x1e2   : > { %v1043_v2 = vrot.slane %v1035_v59, %v3153_v27  ;;  %v1075_v3 = vrot.slane %v1067_v60, %v3153_v27  ;;  %v1050_v19 = vrot.slane %v1036_v4, %v3153_v27  ;;  %v1082_v21 = vrot.slane %v1068_v5, %v3153_v27 }
 0x1e3   : > { %v823_v7 = vrot.slane %v815_v61, %v3153_v27  ;;  %v830_v8 = vrot.slane %v816_v62, %v3153_v27  ;;  %v839_v9 = vrot.slane %v831_v63, %v3153_v27  ;;  %v846_v10 = vrot.slane %v832_v1, %v3153_v27 }
 0x1e4   : > { %v1087_v11 = vcombine.low %v1043_v2, %v1075_v3  ;;  %v1088_v12 = vcombine.high %v1043_v2, %v1075_v3  ;;  %v1089_v31 = vcombine.low %v1050_v19, %v1082_v21  ;;  %v1090_v32 = vcombine.high %v1050_v19, %v1082_v21 }
 0x1e5   : > { %v2266_v13 = vcombine.low %v823_v7, %v830_v8  ;;  %v2268_v14 = vcombine.high %v823_v7, %v830_v8  ;;  %v2270_v15 = vcombine.low %v839_v9, %v846_v10  ;;  %v2272_v16 = vcombine.high %v839_v9, %v846_v10 }
 0x1e6   : > { %v1163_v17 = vpack.c.bf16 %v1087_v11, %v1087_v11  ;;  %v1164_v18 = vpack.c.bf16 %v1088_v12, %v1088_v12  ;;  %v1165_v39 = vpack.c.bf16 %v1089_v31, %v1089_v31  ;;  %v1166_v40 = vpack.c.bf16 %v1090_v32, %v1090_v32 }
 0x1e7   : > { %v963_v22 = vrot.slane %v2266_v13, %v3151_v20  ;;  %v979_v23 = vrot.slane %v2268_v14, %v3151_v20  ;;  %v995_v24 = vrot.slane %v2270_v15, %v3151_v20  ;;  %v1011_v25 = vrot.slane %v2272_v16, %v3151_v20 }
 0x1e8   : > { %v1176_v26 = vsel %vm1171_vm2, %v1163_v17, 0  ;;  %v1222_v28 = vsel %vm1171_vm2, %v1164_v18, 0  ;;  %v1268_v45 = vsel %vm1171_vm2, %v1165_v39, 0  ;;  %v1314_v46 = vsel %vm1171_vm2, %v1166_v40, 0 }
 0x1e9   : > { %2351 = vmatpush3.bf16.xpose.msra.mxu1 %v1176_v26  ;;  %2357 = vmatpush3.bf16.xpose.msra.mxu0 %v1222_v28  ;;  %v1019_v29 = vcombine.low %v963_v22, %v979_v23  ;;  %v1051_v30 = vcombine.low %v995_v24, %v1011_v25  ;;  %v1020_v34 = vcombine.high %v963_v22, %v979_v23 }
 0x1ea   : > { %2362 = vmatprep.subr.bf16.mxu1 %v2853_v0  ;;  %2368 = vmatprep.subr.bf16.mxu0 %v2853_v0  ;;  %v1052_v35 = vcombine.high %v995_v24, %v1011_v25 }
 0x1eb   : > { %v1027_v33 = vrot.slane %v1019_v29, %v3153_v27  ;;  %v1059_v36 = vrot.slane %v1051_v30, %v3153_v27  ;;  %v1034_v43 = vrot.slane %v1020_v34, %v3153_v27 }
 0x1ec   : > { %v1066_v44 = vrot.slane %v1052_v35, %v3153_v27 }
 0x1ed   : > { %v1083_v37 = vcombine.low %v1027_v33, %v1059_v36  ;;  %v1084_v38 = vcombine.high %v1027_v33, %v1059_v36 }
 0x1ee   : > { %v1085_v47 = vcombine.low %v1034_v43, %v1066_v44  ;;  %v1086_v48 = vcombine.high %v1034_v43, %v1066_v44 }
 0x1ef   : > { %v1159_v41 = vpack.c.bf16 %v1083_v37, %v1083_v37  ;;  %v1160_v42 = vpack.c.bf16 %v1084_v38, %v1084_v38 }
 0x1f0   : > { %v1161_v49 = vpack.c.bf16 %v1085_v47, %v1085_v47  ;;  %v1162_v50 = vpack.c.bf16 %v1086_v48, %v1086_v48 }
 0x1f1   : > { %2353 = vmatmul.mubr.msk.bf16.vlgmr.msra.gmra.mxu1 %vm1171_vm2, %v1159_v41  ;;  %2359 = vmatmul.mubr.msk.bf16.vlgmr.msra.gmra.mxu0 %vm1171_vm2, %v1160_v42 }
 0x1f2   : > { %2363 = vmatpush3.bf16.xpose.msra.mxu1 %v1268_v45  ;;  %2369 = vmatpush3.bf16.xpose.msra.mxu0 %v1314_v46 }
 0x1f3   : > { %2364 = vmatprep.mubr.msk.bf16.mxu1 %vm2854_vm0, %v2853_v0  ;;  %2370 = vmatprep.mubr.msk.bf16.mxu0 %vm2854_vm0, %v2853_v0 }
 0x1f4   : > { %2374 = vmatprep.subr.bf16.mxu1 %v2853_v0  ;;  %2380 = vmatprep.subr.bf16.mxu0 %v2853_v0 }
 0x1f9   : > { %2365 = vmatmul.mubr.msk.bf16.vlgmr.msra.gmra.mxu1 %vm1171_vm2, %v1161_v49  ;;  %2371 = vmatmul.mubr.msk.bf16.vlgmr.msra.gmra.mxu0 %vm1171_vm2, %v1162_v50 }
 0x1fa   : > { %2376 = vmatprep.mubr.msk.bf16.mxu1 %vm2854_vm0, %v2853_v0  ;;  %2382 = vmatprep.mubr.msk.bf16.mxu0 %vm2854_vm0, %v2853_v0 }
 0x2b1   : > { %v1212_v52 = vpop.f32.mrf.mxu1  ;;  %v1258_v53 = vpop.f32.mrf.mxu0 }
 0x2b2   : > { %v1357_v54 = vadd.f32 %v1356_v51, %v1212_v52  ;;  %v1358_v55 = vadd.f32 %v1356_v51, %v1258_v53 }
 0x2b3   : > { %v2354_v56 = vpop.f32.mrf.mxu1  ;;  %v2360_v57 = vpop.f32.mrf.mxu0 }
 0x2b4   : > { %v1361_v58 = vsel %vm1171_vm2, %v1357_v54, -inf  ;;  %v1364_v59 = vsel %vm1171_vm2, %v1358_v55, -inf }
 0x2b5   : > { %1362 = vmax.xlane.f32.xlu1 %v1361_v58  ;;  %v1215_v60 = vpop.f32.mrf.mxu1  ;;  %1365 = vmax.xlane.f32.xlu0 %v1364_v59  ;;  %v1261_v61 = vpop.f32.mrf.mxu0 }
 0x2b7   : > { %v2355_v62 = vpop.f32.mrf.mxu1  ;;  %v2361_v63 = vpop.f32.mrf.mxu0 }
 0x2b9   : > { %v1304_v1 = vpop.f32.mrf.mxu1  ;;  %v1350_v2 = vpop.f32.mrf.mxu0 }
 0x2ba   : > { %v1359_v3 = vadd.f32 %v1356_v51, %v1304_v1  ;;  %v1360_v4 = vadd.f32 %v1356_v51, %v1350_v2 }
 0x2bb   : > { %v2366_v5 = vpop.f32.mrf.mxu1  ;;  %v2372_v7 = vpop.f32.mrf.mxu0 }
 0x2bc   : > { %v1367_v8 = vsel %vm1171_vm2, %v1359_v3, -inf  ;;  %v1370_v9 = vsel %vm1171_vm2, %v1360_v4, -inf }
 0x2bd   : > { %v1307_v10 = vpop.f32.mrf.mxu1  ;;  %1368 = vmax.xlane.f32.xlu0 %v1367_v8  ;;  %1371 = vmax.xlane.f32.xlu1 %v1370_v9  ;;  %v1353_v11 = vpop.f32.mrf.mxu0 }
 0x2bf   : > { %v2367_v12 = vpop.f32.mrf.mxu1  ;;  %v2373_v13 = vpop.f32.mrf.mxu0 }
 0x2ce   : > { %742 = vrot.lane.b32.xlu1 %v3142_v6, %s2864_s8  ;;  %s2311_s8 = sshll.u32 %s2980_s27, 9 }
 0x2cf   : > { %s3352_s20 = scalar_lea.hbm %s3439_s16, %s2311_s8 }
 0x2d3   : > { %739 = vrot.lane.b32.xlu0 %v3142_v6, %s2865_s24  ;;  %s2064_s24 = sshll.u32 %s3250_s19, 4  ;;  %s3354_s24 = int_to_ptr.vmem [resolvable:$true] %s2064_s24 }
 0x2d4   : > { %p2744_p5 = scmp.lt.s32.totalorder %s3354_s24, %s2742_s15 }
 0x33e   : > { %v1363_v14 = vpop.xlane.xlu1 %1362  ;;  %v1366_v15 = vpop.xlane.xlu0 %1365 }
 0x33f   : > { %v1373_v16 = vsub.f32 %v1357_v54, %v1363_v14  ;;  %v1374_v17 = vsub.f32 %v1358_v55, %v1366_v15 }
 0x341   : > { %v1377_v18 = vmul.f32 1.442695, %v1373_v16  ;;  %v1379_v19 = vmul.f32 1.442695, %v1374_v17 }
 0x343   : > { %2559 = vpow2.f32 %v1377_v18 }
 0x344   : > { %2561 = vpow2.f32 %v1379_v19 }
 0x346   : > { %v1372_v25 = vpop.xlane.xlu1 %1371  ;;  %v1369_v26 = vpop.xlane.xlu0 %1368 }
 0x347   : > { %v1376_v28 = vsub.f32 %v1360_v4, %v1372_v25  ;;  %v1375_v29 = vsub.f32 %v1359_v3, %v1369_v26 }
 0x349   : > { %v1383_v30 = vmul.f32 1.442695, %v1376_v28  ;;  %v1381_v31 = vmul.f32 1.442695, %v1375_v29 }
 0x34a   : > { %v743_v36 = vpop.permute.xlu1 %742 }
 0x34b   : > { %2563 = vpow2.f32 %v1383_v30 }
 0x34c   : > { %2565 = vpow2.f32 %v1381_v31 }
 0x350   : > { %v2560_v21 = vpop.eup %2559 }
 0x351   : > { %v2562_v22 = vpop.eup %2561  ;;  %v1385_v23 = vsel %vm1171_vm2, %v2560_v21, 0.0 }
 0x352   : > { %1386 = vadd.xlane.f32.xlu0 %v1385_v23  ;;  %v1388_v24 = vsel %vm1171_vm2, %v2562_v22, 0.0 }
 0x353   : > { %1389 = vadd.xlane.f32.xlu1 %v1388_v24 }
 0x358   : > { %v3229_v32 = vpop.eup %2563 }
 0x359   : > { %v3231_v33 = vpop.eup %2565  ;;  %v1394_v34 = vsel %vm1171_vm2, %v3229_v32, 0.0 }
 0x35a   : > { %v1391_v35 = vsel %vm1171_vm2, %v3231_v33, 0.0 }
 0x364   : > { %745 = vrot.lane.b32.xlu1 %v3142_v6, %s2866_s28 }
 0x368   : > { %748 = vrot.lane.b32.xlu0 %v3142_v6, %s2867_s26  ;;  %v740_v6 = vpop.permute.xlu0 %739 }
 0x387   : > { %1395 = vadd.xlane.f32.xlu0 %v1394_v34 }
 0x388   : > { %1392 = vadd.xlane.f32.xlu1 %v1391_v35 }
 0x3db   : > { %v1387_v37 = vpop.xlane.xlu0 %1386 }
 0x3dc   : > { %2567 = vrcp.f32 %v1387_v37  ;;  %v1390_v38 = vpop.xlane.xlu1 %1389 }
 0x3dd   : > { %2569 = vrcp.f32 %v1390_v38 }
 0x3df   : > { %v749_v39 = vpop.permute.xlu0 %748 }
 0x3e0   : > { %v903_v40 = vcombine.low %v743_v36, %v749_v39  ;;  %v904_v41 = vcombine.high %v743_v36, %v749_v39  ;;  %v746_v42 = vpop.permute.xlu1 %745 }
 0x3e1   : > { %v887_v43 = vcombine.low %v740_v6, %v746_v42  ;;  %v888_v44 = vcombine.high %v740_v6, %v746_v42 }
 0x3e2   : > { %v911_v45 = vrot.slane %v903_v40, %v3151_v20  ;;  %v918_v46 = vrot.slane %v904_v41, %v3151_v20 }
 0x3e3   : > { %v895_v47 = vrot.slane %v887_v43, %v3151_v20  ;;  %v902_v48 = vrot.slane %v888_v44, %v3151_v20 }
 0x3e5   : > { %v919_v49 = vcombine.low %v895_v47, %v911_v45  ;;  %v920_v50 = vcombine.high %v895_v47, %v911_v45  ;;  %v935_v51 = vcombine.low %v902_v48, %v918_v46  ;;  %v936_v52 = vcombine.high %v902_v48, %v918_v46 }
 0x3e7   : > { %v927_v53 = vrot.slane %v919_v49, %v3153_v27  ;;  %v934_v54 = vrot.slane %v920_v50, %v3153_v27  ;;  %v943_v55 = vrot.slane %v935_v51, %v3153_v27  ;;  %v950_v56 = vrot.slane %v936_v52, %v3153_v27 }
 0x3e9   : > { %v2568_v57 = vpop.eup %2567  ;;  %v1091_v58 = vcombine.low %v927_v53, %v934_v54  ;;  %v2274_v59 = vcombine.high %v927_v53, %v934_v54  ;;  %v1107_v60 = vcombine.low %v943_v55, %v950_v56  ;;  %v2275_v61 = vcombine.high %v943_v55, %v950_v56 }
 0x3ea   : > { %v2570_v62 = vpop.eup %2569  ;;  %v1401_v63 = vmul.f32 %v2568_v57, %v2560_v21 }
 0x3eb   : > { %v1098_v1 = vrot.slane %v1091_v58, %v3151_v20  ;;  %v1106_v2 = vrot.slane %v2274_v59, %v3151_v20  ;;  %v1114_v3 = vrot.slane %v1107_v60, %v3151_v20  ;;  %v1122_v4 = vrot.slane %v2275_v61, %v3151_v20 }
 0x3ec   : > { %1405 = vst.msk [vmem:[%s3250_s19] sm:$0xff] %vm1171_vm2, %v1401_v63  ;;  %v1402_v5 = vmul.f32 %v2570_v62, %v2562_v22  ;;  %v1409_v26 = vpack.c.bf16 %v1401_v63, %v1401_v63 }
 0x3ed   : > { %v1123_v7 = vcombine.low %v1098_v1, %v1106_v2  ;;  %v1139_v8 = vcombine.low %v1114_v3, %v1122_v4  ;;  %v1124_v9 = vcombine.high %v1098_v1, %v1106_v2  ;;  %v1140_v10 = vcombine.high %v1114_v3, %v1122_v4  ;;  %v2551_v2 = vld [vmem:[#allocation7 + $0x8] sm:$0xff]  }
 0x3ee   : > { %1406 = vst.msk [vmem:[%s3250_s19 + $0x8] sm:$0xff] %vm1171_vm2, %v1402_v5  ;;  %v1410_v28 = vpack.c.bf16 %v1402_v5, %v1402_v5 }
 0x3ef   : > { %v1131_v11 = vrot.slane %v1123_v7, %v3153_v27  ;;  %v1147_v12 = vrot.slane %v1139_v8, %v3153_v27  ;;  %v1138_v13 = vrot.slane %v1124_v9, %v3153_v27  ;;  %v1154_v14 = vrot.slane %v1140_v10, %v3153_v27 }
 0x3f1   : > { %v1155_v15 = vcombine.low %v1131_v11, %v1147_v12  ;;  %v1156_v16 = vcombine.high %v1131_v11, %v1147_v12  ;;  %v1157_v17 = vcombine.low %v1138_v13, %v1154_v14  ;;  %v1158_v18 = vcombine.high %v1138_v13, %v1154_v14  ;;  %v2552_v13 = vld [vmem:[#allocation7] sm:$0xff]  }
 0x3f3   : > { %v1167_v19 = vpack.c.bf16 %v1155_v15, %v1155_v15  ;;  %v1168_v21 = vpack.c.bf16 %v1156_v16, %v1156_v16  ;;  %v1169_v24 = vpack.c.bf16 %v1157_v17, %v1157_v17  ;;  %v1170_v25 = vpack.c.bf16 %v1158_v18, %v1158_v18 }
 0x3f5   : > { %v1418_v22 = vsel %vm1416_vm3, %v1167_v19, 0  ;;  %v1464_v23 = vsel %vm1416_vm3, %v1168_v21, 0  ;;  %v1510_v29 = vsel %vm1416_vm3, %v1169_v24, 0  ;;  %v1556_v30 = vsel %vm1416_vm3, %v1170_v25, 0 }
 0x3f6   : > { %2375 = vmatpush3.bf16.msra.mxu1 %v1418_v22  ;;  %2381 = vmatpush3.bf16.msra.mxu0 %v1464_v23 }
 0x3f7   : > { %2386 = vmatprep.subr.bf16.mxu1 %v2853_v0  ;;  %2392 = vmatprep.subr.bf16.mxu0 %v2853_v0 }
 0x3f9   : > { %2377 = vmatmul.mubr.msk.bf16.vlgmr.msra.gmra.mxu1 %vm1171_vm2, %v1409_v26  ;;  %2383 = vmatmul.mubr.msk.bf16.vlgmr.msra.gmra.mxu0 %vm1171_vm2, %v1410_v28 }
 0x3fa   : > { %2387 = vmatpush3.bf16.msra.mxu1 %v1510_v29  ;;  %2393 = vmatpush3.bf16.msra.mxu0 %v1556_v30 }
 0x3fb   : > { %2388 = vmatprep.mubr.msk.bf16.mxu1 %vm2854_vm0, %v2853_v0  ;;  %2394 = vmatprep.mubr.msk.bf16.mxu0 %vm2854_vm0, %v2853_v0 }
 0x3fc   : > { %2398 = vmatprep.subr.bf16.mxu1 %v2853_v0  ;;  %2406 = vmatprep.subr.bf16.mxu0 %v2853_v0 }
 0x410   : > { %v1396_v31 = vpop.xlane.xlu0 %1395 }
 0x411   : > { %2571 = vrcp.f32 %v1396_v31  ;;  %v1393_v34 = vpop.xlane.xlu1 %1392 }
 0x412   : > { %2573 = vrcp.f32 %v1393_v34 }
 0x41e   : > { %v2572_v35 = vpop.eup %2571 }
 0x41f   : > { %v2574_v6 = vpop.eup %2573  ;;  %v1404_v36 = vmul.f32 %v2572_v35, %v3229_v32 }
 0x420   : > { %v1403_v37 = vmul.f32 %v2574_v6, %v3231_v33 }
 0x421   : > { %1408 = vst.msk [vmem:[%s3250_s19 + $0x18] sm:$0xff] %vm1171_vm2, %v1404_v36  ;;  %v1412_v38 = vpack.c.bf16 %v1404_v36, %v1404_v36 }
 0x422   : > { %1407 = vst.msk [vmem:[%s3250_s19 + $0x10] sm:$0xff] %vm1171_vm2, %v1403_v37  ;;  %v1411_v39 = vpack.c.bf16 %v1403_v37, %v1403_v37  ;;  %s2743_s19 = scalar_lea.vmem %s2742_s15, 1024 }
 0x423   : > { %2395 = vmatmul.mubr.msk.bf16.vlgmr.msra.gmra.mxu0 %vm1171_vm2, %v1412_v38  ;;  %v2286_v38 = vld [vmem:[#allocation8] ss:$0 sm:$0xff] }
 0x424   : > { %2389 = vmatmul.mubr.msk.bf16.vlgmr.msra.gmra.mxu1 %vm1171_vm2, %v1411_v39  ;;  %2410 = vmatprep.mubr.msk.bf16.mxu0 %vm2854_vm0, %v2853_v0 }
 0x425   : > { %2402 = vmatprep.mubr.msk.bf16.mxu1 %vm2854_vm0, %v2853_v0  ;;  %2399 = vmatpush3.bf16.msra.mxu1 %v2551_v2  ;;  %v2558_v2 = vld [vmem:[%s3434_s11] sm:$0xff]  }
 0x426   : > { %2400 = vmatprep.subr.bf16.mxu1 %v2853_v0 }
 0x429   : > { %2401 = vmatpush3.bf16.msra.mxu1 %v2552_v13 }
 0x42a   : > { %2414 = vmatprep.subr.bf16.mxu1 %v2853_v0 }
 0x4b9   : > { %v1454_v40 = vpop.f32.mrf.mxu1  ;;  %v1500_v32 = vpop.f32.mrf.mxu0 }
 0x4bb   : > { %v2378_v41 = vpop.f32.mrf.mxu1  ;;  %v2384_v33 = vpop.f32.mrf.mxu0 }
 0x4bd   : > { %v1457_v42 = vpop.f32.mrf.mxu1  ;;  %v1503_v43 = vpop.f32.mrf.mxu0 }
 0x4bf   : > { %v2379_v44 = vpop.f32.mrf.mxu1  ;;  %v2385_v45 = vpop.f32.mrf.mxu0 }
 0x4e3   : > { %v1592_v46 = vpop.f32.mrf.mxu0 }
 0x4e4   : > { %v1546_v47 = vpop.f32.mrf.mxu1  ;;  %v1614_v48 = vcombine.low %v1500_v32, %v1592_v46  ;;  %v1615_v49 = vcombine.high %v1500_v32, %v1592_v46 }
 0x4e5   : > { %v1598_v50 = vcombine.low %v1454_v40, %v1546_v47  ;;  %v1599_v51 = vcombine.high %v1454_v40, %v1546_v47  ;;  %v2396_v52 = vpop.f32.mrf.mxu0  ;;  %v649_v40 = vld [vmem:[%s642_s18] sm:$0xff] }
 0x4e6   : > { %v1622_v53 = vrot.slane %v1614_v48, %v3151_v20  ;;  %v1629_v54 = vrot.slane %v1615_v49, %v3151_v20  ;;  %v2390_v55 = vpop.f32.mrf.mxu1  ;;  %v2555_v52 = vld [vmem:[%s3434_s11 + $0x18] sm:$0xff]  }
 0x4e7   : > { %v1606_v56 = vrot.slane %v1598_v50, %v3151_v20  ;;  %v1613_v57 = vrot.slane %v1599_v51, %v3151_v20  ;;  %v1595_v58 = vpop.f32.mrf.mxu0  ;;  %v2553_v50 = vld [vmem:[%s3432_s9 + $0x8] sm:$0xff]   ;;  %v2554_v51 = vld [vmem:[%s3432_s9] sm:$0xff]  }
 0x4e8   : > { %v1549_v59 = vpop.f32.mrf.mxu1  ;;  %2407 = vmatpush3.bf16.msra.mxu0 %v2553_v50  ;;  %v2290_v58 = vld [vmem:[#allocation10] ss:$0 sm:$0xff] }
 0x4e9   : > { %v1630_v60 = vcombine.low %v1606_v56, %v1622_v53  ;;  %v1631_v61 = vcombine.high %v1606_v56, %v1622_v53  ;;  %v1646_v62 = vcombine.low %v1613_v57, %v1629_v54  ;;  %v1647_v63 = vcombine.high %v1613_v57, %v1629_v54  ;;  %v2397_v1 = vpop.f32.mrf.mxu0  ;;  %2408 = vmatprep.subr.bf16.mxu0 %v2853_v0  ;;  %v2556_v53 = vld [vmem:[%s3434_s11 + $0x10] sm:$0xff]  }
 0x4ea   : > { %v2391_v3 = vpop.f32.mrf.mxu1  ;;  %v2557_v1 = vld [vmem:[%s3434_s11 + $0x8] sm:$0xff]  }
 0x4eb   : > { %v1638_v4 = vrot.slane %v1630_v60, %v3153_v27  ;;  %v1645_v5 = vrot.slane %v1631_v61, %v3153_v27  ;;  %v1654_v7 = vrot.slane %v1646_v62, %v3153_v27  ;;  %v1661_v8 = vrot.slane %v1647_v63, %v3153_v27  ;;  %v2291_v60 = vld [vmem:[#allocation11] ss:$0 sm:$0xff]  ;;  %v2292_v3 = vld [vmem:[%s3433_s10] ss:$0 sm:$0xff] }
 0x4ec   : > { %2409 = vmatpush3.bf16.msra.mxu0 %v2554_v51 }
 0x4ed   : > { %v1666_v9 = vcombine.low %v1638_v4, %v1645_v5  ;;  %v2284_v10 = vcombine.high %v1638_v4, %v1645_v5  ;;  %v1682_v11 = vcombine.low %v1654_v7, %v1661_v8  ;;  %v2285_v12 = vcombine.high %v1654_v7, %v1661_v8 }
 0x4ef   : > { %v1673_v14 = vrot.slane %v1666_v9, %v3151_v20  ;;  %v1681_v15 = vrot.slane %v2284_v10, %v3151_v20  ;;  %v1689_v16 = vrot.slane %v1682_v11, %v3151_v20  ;;  %v1697_v17 = vrot.slane %v2285_v12, %v3151_v20 }
 0x4f1   : > { %v1699_v18 = vcombine.high %v1673_v14, %v1681_v15  ;;  %v1715_v19 = vcombine.high %v1689_v16, %v1697_v17  ;;  %v1698_v21 = vcombine.low %v1673_v14, %v1681_v15  ;;  %v1714_v22 = vcombine.low %v1689_v16, %v1697_v17 }
 0x4f3   : > { %v1713_v23 = vrot.slane %v1699_v18, %v3153_v27  ;;  %v1729_v24 = vrot.slane %v1715_v19, %v3153_v27  ;;  %v1706_v25 = vrot.slane %v1698_v21, %v3153_v27  ;;  %v1722_v26 = vrot.slane %v1714_v22, %v3153_v27 }
 0x4f5   : > { %v1732_v28 = vcombine.low %v1713_v23, %v1729_v24  ;;  %v1731_v29 = vcombine.high %v1706_v25, %v1722_v26  ;;  %v1730_v30 = vcombine.low %v1706_v25, %v1722_v26  ;;  %v1733_v20 = vcombine.high %v1713_v23, %v1729_v24 }
 0x4f7   : > { %1739 = vrot.lane.b32.xlu1 %v1732_v28, %s2868_s6  ;;  %1735 = vrot.lane.b32.xlu0 %v1731_v29, %s2869_s0  ;;  %s2038_s6 = scalar_lea.sflag [#allocation15], %s3105_s23 }
 0x4fb   : > { %1743 = vrot.lane.b32.xlu1 %v1733_v20, %s2870_s14  ;;  %s2737_s14 = scalar_lea.vmem %s3354_s24, 512 }
 0x4fc   : > { %p2738_p12 = scmp.ne.s32.totalorder %s3354_s24, %s2737_s14  ;;  %p2745_p8 = scmp.lt.s32.totalorder %s2743_s19, %s2737_s14 }
 0x4fe   : > { %p2739_p1 = pnand %p2738_p12, %p3484_p0  ;;  %p2746_p7 = por %p2745_p8, %p2744_p5 }
 0x500   : > { %p2740_p2 = pneg %p2739_p1 }
 0x502   : > { %p2747_p13 = pnand %p2746_p7, %p2740_p2 }
 0x569   : > { %v1740_v31 = vpop.permute.xlu1 %1739  ;;  %v1736_v34 = vpop.permute.xlu0 %1735 }
 0x56a   : > { %v1746_v35 = vsel %vm1171_vm2, %v1730_v30, %v1736_v34 }
 0x56b   : > { %v1748_v27 = vsel %vm1747_vm4, %v1746_v35, %v1740_v31 }
 0x56d   : > { %v1744_v6 = vpop.permute.xlu1 %1743 }
 0x56e   : > { %v1750_v36 = vsel %vm1749_vm5, %v1748_v27, %v1744_v6 }
 0x56f   : > { %v1751_v37 = vpack.c.bf16 %v1750_v36, %v1750_v36 }
 0x571   : > { %2403 = vmatmul.mubr.msk.bf16.vlgmr.msra.gmra.mxu1 %vm673_vm1, %v1751_v37 }
 0x572   : > { %2422 = vmatprep.mubr.msk.bf16.mxu1 %vm2854_vm0, %v2853_v0  ;;  %2415 = vmatpush3.bf16.msra.mxu1 %v2555_v52 }
 0x573   : > { %2416 = vmatprep.subr.bf16.mxu1 %v2853_v0 }
 0x576   : > { %2417 = vmatpush3.bf16.msra.mxu1 %v2556_v53 }
 0x577   : > { %2418 = vmatprep.subr.bf16.mxu1 %v2853_v0 }
 0x57a   : > { %2419 = vmatpush3.bf16.msra.mxu1 %v2557_v1 }
 0x57b   : > { %2420 = vmatprep.subr.bf16.mxu1 %v2853_v0  ;;  %v2296_v0 = vld [vmem:[%s3435_s12] ss:$0 sm:$0xff] }
 0x57e   : > { %2421 = vmatpush3.bf16.msra.mxu1 %v2558_v2 }
 0x631   : > { %v1812_v39 = vpop.f32.mrf.mxu1 }
 0x632   : > { %v1813_v32 = vadd.f32 %v2286_v38, %v1812_v39 }
 0x633   : > { %v2404_v41 = vpop.f32.mrf.mxu1 }
 0x634   : > { %v1818_v33 = vadd.f32 %v1813_v32, %v649_v40 }
 0x635   : > { %v1815_v42 = vpop.f32.mrf.mxu1 }
 0x636   : > { %v1821_v43 = vsel %vm673_vm1, %v1818_v33, 0.0 }
 0x637   : > { %1822 = vadd.xlane.f32.xlu0 %v1821_v43  ;;  %v2405_v44 = vpop.f32.mrf.mxu1 }
 0x6c0   : > { %v1823_v45 = vpop.xlane.xlu0 %1822 }
 0x6c1   : > { %v1825_v46 = vmul.f32 0.03125, %v1823_v45 }
 0x6c3   : > { %v1826_v47 = vsub.f32 %v1818_v33, %v1825_v46 }
 0x6c5   : > { %v1827_v48 = vmul.f32 %v1826_v47, %v1826_v47 }
 0x6c7   : > { %v1828_v49 = vsel %vm673_vm1, %v1827_v48, 0.0 }
 0x6c8   : > { %1829 = vadd.xlane.f32.xlu1 %v1828_v49 }
 0x751   : > { %v1830_v54 = vpop.xlane.xlu1 %1829 }
 0x752   : > { %v1831_v55 = vmul.f32 0.03125, %v1830_v54 }
 0x754   : > { %v1832_v56 = vadd.f32 1e-05, %v1831_v55 }
 0x756   : > { %2575 = vrsqrt.f32 %v1832_v56 }
 0x763   : > { %v2576_v57 = vpop.eup %2575 }
 0x764   : > { %v1834_v59 = vmul.f32 %v2576_v57, %v1826_v47 }
 0x766   : > { %v1841_v61 = vmul.f32 %v2290_v58, %v1834_v59 }
 0x768   : > { %v1848_v62 = vadd.f32 %v2291_v60, %v1841_v61 }
 0x76a   : > { %v1849_v63 = vpack.c.bf16 %v1848_v62, %v1848_v62 }
 0x76c   : > { %2411 = vmatmul.mubr.msk.bf16.vlgmr.msra.gmra.mxu0 %vm673_vm1, %v1849_v63 }
 0x82c   : > { %v1910_v4 = vpop.f32.mrf.mxu0 }
 0x82d   : > { %v1911_v5 = vadd.f32 %v2292_v3, %v1910_v4 }
 0x82e   : > { %v2412_v7 = vpop.f32.mrf.mxu0 }
 0x82f   : > { %v1916_v8 = vmax.f32 %v1911_v5, 0.0 }
 0x830   : > { %v1913_v9 = vpop.f32.mrf.mxu0 }
 0x831   : > { %v1917_v10 = vpack.c.bf16 %v1916_v8, %v1916_v8 }
 0x832   : > { %v2413_v11 = vpop.f32.mrf.mxu0 }
 0x833   : > { %2423 = vmatmul.mubr.msk.bf16.vlgmr.msra.gmra.mxu1 %vm1957_vm6, %v1917_v10 }
 0x8f3   : > { %v1995_v12 = vpop.f32.mrf.mxu1 }
 0x8f4   : > { %v1996_v13 = vadd.f32 %v2296_v0, %v1995_v12 }
 0x8f5   : > { %v2424_v14 = vpop.f32.mrf.mxu1 }
 0x8f6   : > { %v2001_v15 = vadd.f32 %v1996_v13, %v1848_v62 }
 0x8f7   : > { %v1998_v16 = vpop.f32.mrf.mxu1 }
 0x8f8   : > { %v2004_v17 = vsel %vm673_vm1, %v2001_v15, 0.0 }
 0x8f9   : > { %2005 = vadd.xlane.f32.xlu0 %v2004_v17  ;;  %v2425_v18 = vpop.f32.mrf.mxu1 }
 0x982   : > { %v2006_v19 = vpop.xlane.xlu0 %2005 }
 0x983   : > { %v2007_v21 = vmul.f32 0.03125, %v2006_v19 }
 0x985   : > { %v2008_v22 = vsub.f32 %v2001_v15, %v2007_v21 }
 0x987   : > { %v2009_v23 = vmul.f32 %v2008_v22, %v2008_v22 }
 0x989   : > { %v2010_v24 = vsel %vm673_vm1, %v2009_v23, 0.0 }
 0x98a   : > { %2011 = vadd.xlane.f32.xlu0 %v2010_v24 }
 0x98b   : > { %2750 = shalt.err (!%p2747_p13)
}
 0x98c   : > { %s2751_s18 = scalar_lea.hbm %s3352_s20, 512  ;;  %s2755_s7 = scalar_lea.hbm %s3439_s16, 1024 }
 0x98d   : > { %p2752_p6 = scmp.ne.s32.totalorder %s3352_s20, %s2751_s18  ;;  %p2756_p9 = scmp.lt.s32.totalorder %s3352_s20, %s3439_s16 }
 0x98e   : > { %p2757_p10 = scmp.lt.s32.totalorder %s2755_s7, %s2751_s18 }
 0x98f   : > { %p2753_p3 = pnand %p2752_p6, %p3484_p0 }
 0x990   : > { %p2758_p11 = por %p2757_p10, %p2756_p9 }
 0x991   : > { %p2754_p4 = pneg %p2753_p3 }
 0x993   : > { %p2759_p12 = pnand %p2758_p11, %p2754_p4 }
 0x995   : > { %2762 = shalt.err (!%p2759_p12)
}
 0x996   : > { %s2872_s26 = smov 128   ;;  %s2258_s14 = sshll.u32 %s3105_s23, 3  ;;  %v2302_v30 = vld [vmem:[%s3436_s13] ss:$0 sm:$0xff] }
 0x997   : > { %2449 = dma.vmem_to_hbm [thread:$0]  (%p3484_p0), %s3354_s24, 512, %s3352_s20, %s2038_s6, %s2872_s26, %s2872_s26, %s2869_s0  }
 0x998   : > { %s3485_s29 = sld [smem:[#allocation32_spill]]  ;;  %s2306_s25 = sshll.u32 %s2980_s27, 7 }
 0x999   : > { %s631_s7 = scalar_lea.vmem [#allocation13], %s2258_s14  ;;  %s3486_s6 = sld [smem:[#allocation33_spill]] }
 0x99a   : > { %s2051_s0 = sshll.u32 %s631_s7, 4  ;;  %s2033_s28 = scalar_lea.sflag [#allocation4], %s3105_s23  ;;  %s2052_s0 = int_to_ptr.vmem [resolvable:$true] %s2051_s0 }
 0x99b   : > { %s2763_s26 = scalar_lea.vmem %s2052_s0, 128  ;;  %s2873_s5 = smov [#allocation13]  }
 0x99c   : > { %p2764_p1 = scmp.ne.s32.totalorder %s2052_s0, %s2763_s26  ;;  %s2767_s15 = sshll.u32 %s2873_s5, 4  ;;  %s2768_s15 = int_to_ptr.vmem [resolvable:$false] %s2767_s15 }
 0x99d   : > { %s2769_s27 = scalar_lea.vmem %s2768_s15, 256  ;;  %p2770_p8 = scmp.lt.s32.totalorder %s2052_s0, %s2768_s15 }
 0x99e   : > { %v2303_v31 = vld [vmem:[%s3485_s29] ss:$0 sm:$0xff]  ;;  %p2765_p2 = pnand %p2764_p1, %p3484_p0  ;;  %p2771_p7 = scmp.lt.s32.totalorder %s2769_s27, %s2763_s26 }
 0x99f   : > { %s2049_s8 = scalar_lea.hbm %s3486_s6, %s2306_s25 }
 0x9a0   : > { %p2766_p5 = pneg %p2765_p2  ;;  %p2772_p13 = por %p2771_p7, %p2770_p8 }
 0x9a2   : > { %p2773_p6 = pnand %p2772_p13, %p2766_p5 }
 0xa13   : > { %v2012_v25 = vpop.xlane.xlu0 %2011 }
 0xa14   : > { %v2013_v26 = vmul.f32 0.03125, %v2012_v25 }
 0xa16   : > { %v2014_v28 = vadd.f32 1e-05, %v2013_v26 }
 0xa18   : > { %2577 = vrsqrt.f32 %v2014_v28 }
 0xa25   : > { %v2578_v29 = vpop.eup %2577 }
 0xa26   : > { %v2016_v20 = vmul.f32 %v2578_v29, %v2008_v22 }
 0xa28   : > { %v2023_v34 = vmul.f32 %v2302_v30, %v2016_v20 }
 0xa2a   : > { %v2030_v35 = vadd.f32 %v2303_v31, %v2023_v34 }
 0xa2c   : > { %2031 = vst.msk [vmem:[%s631_s7] sm:$0xff] %vm673_vm1, %v2030_v35 }
 0xa2d   : > { %2776 = shalt.err (!%p2773_p6)
}
 0xa2e   : > { %s2777_s14 = scalar_lea.hbm %s2049_s8, 128  ;;  %s2781_s18 = scalar_lea.hbm %s3486_s6, 256 }
 0xa2f   : > { %p2778_p3 = scmp.ne.s32.totalorder %s2049_s8, %s2777_s14  ;;  %p2782_p10 = scmp.lt.s32.totalorder %s2049_s8, %s3486_s6 }
 0xa30   : > { %p2783_p11 = scmp.lt.s32.totalorder %s2781_s18, %s2777_s14 }
 0xa31   : > { %p2779_p4 = pnand %p2778_p3, %p3484_p0 }
 0xa32   : > { %p2784_p12 = por %p2783_p11, %p2782_p10 }
 0xa33   : > { %p2780_p9 = pneg %p2779_p4 }
 0xa35   : > { %p2785_p1 = pnand %p2784_p12, %p2780_p9 }
 0xa37   : > { %2788 = shalt.err (!%p2785_p1)
}
 0xa38   : > { %2448 = dma.vmem_to_hbm [thread:$0]  (%p3484_p0), %s2052_s0, 128, %s2049_s8, %s2033_s28  }
 0xa39 PF: > { %s3487_s7 = sld [smem:[#allocation23_spill]]  ;;  %s2079_s24 = sand.u32 1, %s2831_s21  }
 0xa3a   : > { %p3488_p2 = scmp.ne.s32.totalorder %s3473_s17, 0  ;;  %s2080_s20 = scalar_lea.sflag [#allocation4], %s2079_s24 }
 0xa3f   : > { %p3489_p5 = scmp.ge.s32.totalorder %s3487_s7, 2 }
 0xa41   : > { %p2473_p8 = pnand %p3489_p5, %p3488_p2 }
 0xa43   : > { %p2474_p7 = pneg %p2473_p8 }
 0xa45   : > { %2822 = dma.done.wait (%p2474_p7), %s2080_s20, 128  }
 0xa46   : > { %2824 = vsyncadd (%p2474_p7), %s2080_s20, 4294967168  ;;  %s2089_s26 = scalar_lea.sflag [#allocation15], %s2079_s24 }
 0xa47   : > { %2826 = dma.done.wait (%p2474_p7), %s2089_s26, 512  }
 0xa48   : > { %2828 = vsyncadd (%p2474_p7), %s2089_s26, 4294966784  ;;  %s3490_s24 = sld [smem:[#allocation24_spill]]  ;;  %s3493_s21 = smov %s2835_s22 }
 0xa49   : > { %s3491_s5 = sld [smem:[#allocation22_spill]] }
 0xa4a   : > { %s3492_s23 = sld [smem:[#allocation25_spill]] }
 0xa4e   : > { %p36_p0 = scmp.ge.s32.totalorder %s3490_s24, 4  }
 0xa4f   : > { %s3494_s22 = smov %s3491_s5 }
 0xa50   :  { %38 = sbr.rel (!%p36_p0) target bundleno = 19 (0x13), region = 168 }
 0xa55   :  { %2094 = vsyncpa [#allocation3], 1 }
 0xa56   :  { %2096 = vsyncpa [#allocation3 + $0x1], 1 }
 0xa57   :  { %2097 = vsyncpa [#allocation6], 1 }
 0xa58   :  { %2098 = vsyncpa [#allocation9], 1 }
 0xa59   :  { %2099 = vsyncpa [#allocation12], 1 }
 0xa5a   :  { %2100 = vsyncpa [#allocation4], 1 }
 0xa5b   :  { %2102 = vsyncpa [#allocation4 + $0x1], 1 }
 0xa5c   :  { %2103 = vsyncpa [#allocation15], 1 }
 0xa5d   :  { %2105 = vsyncpa [#allocation15 + $0x1], 1 }

</bundles_post_ra>
